<compile_context>
chip_gen: v5e
topology: v5e:2x2
jax: 0.10.0
libtpu: 0.0.40
codegen_flags: <defaults>
</compile_context>

<pallas_src>
import functools

import jax
import jax.numpy as jnp
from jax import lax
from jax.experimental import pallas as pl
from jax.experimental.pallas import tpu as pltpu


# ---------------------------------------------------------------------------
# Pallas kernels
# ---------------------------------------------------------------------------

@functools.lru_cache(maxsize=None)
def make_decoder_block_kernel(embed_size, heads):
    D = embed_size // heads
    inv_scale = 1.0 / (embed_size ** 0.5)

    def attend(q2d, kv2d, mask2d, wq, wk, wv, fc_w, fc_b):
        # q2d: (Lq, E) f32, kv2d: (Lk, E) f32, mask2d: (Lq, Lk) f32.
        # wq/wk/wv: (E, E) bf16 block-diagonal per-head projections (y = x @ w).
        # fc_w: (E, E) bf16 in (in, out) layout, fc_b: (1, E) f32.
        qp = jnp.dot(q2d.astype(jnp.bfloat16), wq,
                     preferred_element_type=jnp.float32)          # (Lq, E)
        kp = jnp.dot(kv2d.astype(jnp.bfloat16), wk,
                     preferred_element_type=jnp.float32)          # (Lk, E)
        vp = jnp.dot(kv2d.astype(jnp.bfloat16), wv,
                     preferred_element_type=jnp.float32)          # (Lk, E)

        lq = q2d.shape[0]
        ones_q = jnp.ones((lq, 1), jnp.float32)
        acc = None
        for h in range(heads):                        # static unroll, small H
            sl = slice(h * D, (h + 1) * D)
            qh, kh, vh = qp[:, sl], kp[:, sl], vp[:, sl]
            # energy[q, k] = qh[q] . kh[k]  (contract last dims, no transpose)
            energy = lax.dot_general(qh, kh, (((1,), (1,)), ((), ())),
                                     preferred_element_type=jnp.float32)
            energy = jnp.where(mask2d == 0.0, jnp.float32(-1e28), energy)
            energy = energy * inv_scale
            energy = energy - jnp.max(energy, axis=-1, keepdims=True)
            p = jnp.exp(energy)
            attn = p * pl.reciprocal(jnp.sum(p, axis=-1, keepdims=True),
                                     approx=True)
            # einsum('nhql,nlhd->nlhd'): scale value row l by sum_q attn[q, l].
            colsum = lax.dot_general(attn, ones_q, (((0,), (0,)), ((), ())),
                                     preferred_element_type=jnp.float32)  # (Lk, 1)
            scaled_vh = vh * colsum                                        # (Lk, D)
            # Head-merge fused into fc_out: out += scaled_vh @ fc_w[hD:(h+1)D].
            contrib = jnp.dot(scaled_vh.astype(jnp.bfloat16), fc_w[sl, :],
                              preferred_element_type=jnp.float32)          # (Lk, E)
            acc = contrib if acc is None else acc + contrib
        return acc + fc_b

    def add_layernorm(x, res, g, b):
        y = x + res
        mean = jnp.mean(y, axis=-1, keepdims=True)
        var = jnp.mean((y - mean) ** 2, axis=-1, keepdims=True)
        return (y - mean) * lax.rsqrt(var + 1e-5) * g + b

    def kernel(x_ref, enc_ref, tmask_ref, smask_ref,
               wq1, wk1, wv1, fc1_w, fc1_b, lna_g, lna_b,
               wq2, wk2, wv2, fc2_w, fc2_b, ln1_g, ln1_b,
               ff_w1, ff_b1, ff_w2, ff_b2, ln2_g, ln2_b,
               o_ref):
        x = x_ref[0]            # (L, E)
        enc = enc_ref[0]        # (Ls, E)
        tmask = tmask_ref[0]    # (L, L)
        smask = smask_ref[0]    # (L, Ls)

        # --- self attention + add & norm ------------------------------------
        a1 = attend(x, x, tmask, wq1[...], wk1[...], wv1[...],
                    fc1_w[...], fc1_b[...])
        query = add_layernorm(a1, x, lna_g[...], lna_b[...])
        # TODO(synk): nn.Dropout layers are identity (inference mode).

        # --- cross attention + add & norm -----------------------------------
        a2 = attend(query, enc, smask, wq2[...], wk2[...], wv2[...],
                    fc2_w[...], fc2_b[...])
        x2 = add_layernorm(a2, query, ln1_g[...], ln1_b[...])

        # --- feed forward + add & norm --------------------------------------
        h = jnp.dot(x2.astype(jnp.bfloat16), ff_w1[...],
                    preferred_element_type=jnp.float32) + ff_b1[...]
        h = jnp.maximum(h, 0.0)
        ff = jnp.dot(h.astype(jnp.bfloat16), ff_w2[...],
                     preferred_element_type=jnp.float32) + ff_b2[...]
        o_ref[0] = add_layernorm(ff, x2, ln2_g[...], ln2_b[...]).astype(o_ref.dtype)

    return kernel


def output_heads_kernel(x_ref, w_ref, b_ref, o_ref):
    # Fused fc_out_sr / fc_out_deprel: lane-dense (E, 128)-padded projection.
    o_ref[...] = (jnp.dot(x_ref[...].astype(jnp.bfloat16), w_ref[...],
                          preferred_element_type=jnp.float32) + b_ref[...])


# ---------------------------------------------------------------------------
# Pallas wrappers
# ---------------------------------------------------------------------------

_PARAM_ORDER = ('wq1', 'wk1', 'wv1', 'fc1_w', 'fc1_b', 'lna_g', 'lna_b',
                'wq2', 'wk2', 'wv2', 'fc2_w', 'fc2_b', 'ln1_g', 'ln1_b',
                'ff_w1', 'ff_b1', 'ff_w2', 'ff_b2', 'ln2_g', 'ln2_b')


def pl_decoder_block(x, enc_out, tmask, smask, lp, heads):
    N, L, E = x.shape
    Ls = enc_out.shape[1]
    # The reference einsum + reshape requires key/value length == query length.
    assert Ls == L, "reference module requires enc seq len == dec seq len"

    kernel = make_decoder_block_kernel(E, heads)
    param_list = [lp[k] for k in _PARAM_ORDER]

    def rep_spec(a):
        return pl.BlockSpec(a.shape, lambda i, nd=a.ndim: (0,) * nd)

    in_specs = ([pl.BlockSpec((1, L, E), lambda i: (i, 0, 0)),
                 pl.BlockSpec((1, Ls, E), lambda i: (i, 0, 0)),
                 pl.BlockSpec((1, L, L), lambda i: (i, 0, 0)),
                 pl.BlockSpec((1, L, Ls), lambda i: (i, 0, 0))]
                + [rep_spec(a) for a in param_list])

    return pl.pallas_call(
        kernel,
        out_shape=jax.ShapeDtypeStruct((N, L, E), jnp.float32),
        grid=(N,),
        in_specs=in_specs,
        out_specs=pl.BlockSpec((1, L, E), lambda i: (i, 0, 0)),
        compiler_params=pltpu.CompilerParams(dimension_semantics=("parallel",)),
    )(x, enc_out, tmask, smask, *param_list)


def pl_output_heads(x2d, w, b):
    M = x2d.shape[0]
    n_out = w.shape[1]
    return pl.pallas_call(
        output_heads_kernel,
        out_shape=jax.ShapeDtypeStruct((M, n_out), jnp.float32),
    )(x2d, w, b)


# ---------------------------------------------------------------------------
# Model forward (JAX glue around the Pallas kernels)
# ---------------------------------------------------------------------------

def decoder_forward(params, x_sr, x_deprel, enc_out, src_mask, target_mask, heads):
    N, L = x_sr.shape
    Ls = enc_out.shape[1]

    positions = jnp.arange(L)
    # Embedding lookups are gathers -> kept in JAX glue.
    x = (params['sr_emb'][x_sr]
         + params['deprel_emb'][x_deprel]
         + params['pos_emb'][positions][None, :, :])
    # TODO(synk): nn.Dropout layers are identity (inference mode).

    # Masks broadcast once (shared across heads), kept compact at (N, Lq, Lk).
    tmask = jnp.broadcast_to(target_mask[:, 0], (N, L, L)).astype(jnp.float32)
    smask = jnp.broadcast_to(src_mask[:, 0], (N, L, Ls)).astype(jnp.float32)

    for lp in params['layers']:
        x = pl_decoder_block(x, enc_out, tmask, smask, lp, heads)

    # Fused lane-dense output projection for both vocab heads, split afterwards.
    E = x.shape[-1]
    out_all = pl_output_heads(x.reshape(N * L, E), params['out_w'], params['out_b'])
    vsr, vdep = params['vocab_sr'], params['vocab_dep']
    out_sr = out_all[:, :vsr].reshape(N, L, vsr)
    out_deprel = out_all[:, vsr:vsr + vdep].reshape(N, L, vdep)
    return out_sr, out_deprel


# ---------------------------------------------------------------------------
# Parameter init (PyTorch layout) and kernel-layout preparation
# ---------------------------------------------------------------------------

def init_params(key, trg_vocab_sr, trg_vocab_dep, embed_size, num_layers,
                heads, forward_expansion, max_length):
    D = embed_size // heads
    keys = iter(jax.random.split(key, 256))

    def nrm(shape, scale=0.05):
        return jax.random.normal(next(keys), shape, jnp.float32) * scale

    def attn_params():
        return dict(wq=nrm((D, D)), wk=nrm((D, D)), wv=nrm((D, D)),
                    fc_w=nrm((embed_size, embed_size)), fc_b=nrm((embed_size,)))

    def tb_params():
        F = forward_expansion * embed_size
        return dict(attn=attn_params(),
                    ln1_g=jnp.ones((embed_size,), jnp.float32),
                    ln1_b=jnp.zeros((embed_size,), jnp.float32),
                    ln2_g=jnp.ones((embed_size,), jnp.float32),
                    ln2_b=jnp.zeros((embed_size,), jnp.float32),
                    ff_w1=nrm((F, embed_size)), ff_b1=nrm((F,)),
                    ff_w2=nrm((embed_size, F)), ff_b2=nrm((embed_size,)))

    layers = [dict(self_attn=attn_params(),
                   ln_g=jnp.ones((embed_size,), jnp.float32),
                   ln_b=jnp.zeros((embed_size,), jnp.float32),
                   tb=tb_params())
              for _ in range(num_layers)]

    return dict(
        sr_emb=nrm((trg_vocab_sr, embed_size), 0.1),
        deprel_emb=nrm((trg_vocab_dep, embed_size), 0.1),
        pos_emb=nrm((max_length, embed_size), 0.1),
        layers=layers,
        fc_sr_w=nrm((trg_vocab_sr, embed_size)), fc_sr_b=nrm((trg_vocab_sr,)),
        fc_dep_w=nrm((trg_vocab_dep, embed_size)), fc_dep_b=nrm((trg_vocab_dep,)),
    )


def prepare_params(raw, heads):
    """Pre-transpose weights to (in, out), build block-diagonal head projections,
    cast matmul weights to bf16, and fuse + lane-pad the output heads."""
    eye = jnp.eye(heads, dtype=jnp.float32)

    def prep_attn(ap, tag):
        return {
            f'wq{tag}': jnp.kron(eye, ap['wq'].T).astype(jnp.bfloat16),
            f'wk{tag}': jnp.kron(eye, ap['wk'].T).astype(jnp.bfloat16),
            f'wv{tag}': jnp.kron(eye, ap['wv'].T).astype(jnp.bfloat16),
            f'fc{tag}_w': ap['fc_w'].T.astype(jnp.bfloat16),
            f'fc{tag}_b': ap['fc_b'].reshape(1, -1),
        }

    layers = []
    for lp in raw['layers']:
        d = {}
        d.update(prep_attn(lp['self_attn'], 1))
        d['lna_g'] = lp['ln_g'].reshape(1, -1)
        d['lna_b'] = lp['ln_b'].reshape(1, -1)
        tb = lp['tb']
        d.update(prep_attn(tb['attn'], 2))
        d['ln1_g'] = tb['ln1_g'].reshape(1, -1)
        d['ln1_b'] = tb['ln1_b'].reshape(1, -1)
        d['ff_w1'] = tb['ff_w1'].T.astype(jnp.bfloat16)   # (E, F)
        d['ff_b1'] = tb['ff_b1'].reshape(1, -1)
        d['ff_w2'] = tb['ff_w2'].T.astype(jnp.bfloat16)   # (F, E)
        d['ff_b2'] = tb['ff_b2'].reshape(1, -1)
        d['ln2_g'] = tb['ln2_g'].reshape(1, -1)
        d['ln2_b'] = tb['ln2_b'].reshape(1, -1)
        layers.append(d)

    vsr = raw['fc_sr_w'].shape[0]
    vdep = raw['fc_dep_w'].shape[0]
    w = jnp.concatenate([raw['fc_sr_w'], raw['fc_dep_w']], axis=0)   # (Vsr+Vdep, E)
    b = jnp.concatenate([raw['fc_sr_b'], raw['fc_dep_b']], axis=0)
    pad = (-w.shape[0]) % 128                                        # lane-dense store
    if pad:
        w = jnp.pad(w, ((0, pad), (0, 0)))
        b = jnp.pad(b, (0, pad))

    return dict(
        sr_emb=raw['sr_emb'], deprel_emb=raw['deprel_emb'], pos_emb=raw['pos_emb'],
        layers=layers,
        out_w=w.T.astype(jnp.bfloat16),   # (E, 128)
        out_b=b.reshape(1, -1),           # (1, 128)
        vocab_sr=vsr, vocab_dep=vdep,
    )


# ---------------------------------------------------------------------------
# Main
# ---------------------------------------------------------------------------

if __name__ == "__main__":
    N, L = 2, 8                 # batch, decoder/encoder seq len (must match, as the
                                # reference module's reshape requires)
    EMBED, HEADS = 32, 4
    NUM_LAYERS, FWD_EXP = 2, 2
    VOCAB_SR, VOCAB_DEP, MAX_LEN = 11, 7, 16

    root = jax.random.PRNGKey(0)
    pkey, k1, k2, k3 = jax.random.split(root, 4)

    raw_params = init_params(pkey, VOCAB_SR, VOCAB_DEP, EMBED, NUM_LAYERS,
                             HEADS, FWD_EXP, MAX_LEN)
    params = prepare_params(raw_params, HEADS)

    x_sr = jax.random.randint(k1, (N, L), 0, VOCAB_SR)
    x_deprel = jax.random.randint(k2, (N, L), 0, VOCAB_DEP)
    enc_out = jax.random.normal(k3, (N, L, EMBED), jnp.float32)

    src_mask = jnp.ones((N, 1, 1, L), jnp.float32)
    target_mask = jnp.broadcast_to(
        jnp.tril(jnp.ones((L, L), jnp.float32))[None, None, :, :], (N, 1, L, L))

    out_sr, out_deprel = decoder_forward(params, x_sr, x_deprel, enc_out,
                                         src_mask, target_mask, HEADS)
    jax.block_until_ready((out_sr, out_deprel))

    assert out_sr.shape == (N, L, VOCAB_SR)
    assert out_deprel.shape == (N, L, VOCAB_DEP)
    print("KERNEL_OK")
</pallas_src>

<mosaic_0001>
module attributes {stable_mosaic.version = 11 : i64} {
  func.func @kernel(%arg0: i32, %arg1: memref<1x8x32xf32, #tpu.memory_space<vmem>>, %arg2: memref<1x8x32xf32, #tpu.memory_space<vmem>>, %arg3: memref<1x8x8xf32, #tpu.memory_space<vmem>>, %arg4: memref<1x8x8xf32, #tpu.memory_space<vmem>>, %arg5: memref<32x32xbf16, #tpu.memory_space<vmem>>, %arg6: memref<32x32xbf16, #tpu.memory_space<vmem>>, %arg7: memref<32x32xbf16, #tpu.memory_space<vmem>>, %arg8: memref<32x32xbf16, #tpu.memory_space<vmem>>, %arg9: memref<1x32xf32, #tpu.memory_space<vmem>>, %arg10: memref<1x32xf32, #tpu.memory_space<vmem>>, %arg11: memref<1x32xf32, #tpu.memory_space<vmem>>, %arg12: memref<32x32xbf16, #tpu.memory_space<vmem>>, %arg13: memref<32x32xbf16, #tpu.memory_space<vmem>>, %arg14: memref<32x32xbf16, #tpu.memory_space<vmem>>, %arg15: memref<32x32xbf16, #tpu.memory_space<vmem>>, %arg16: memref<1x32xf32, #tpu.memory_space<vmem>>, %arg17: memref<1x32xf32, #tpu.memory_space<vmem>>, %arg18: memref<1x32xf32, #tpu.memory_space<vmem>>, %arg19: memref<32x64xbf16, #tpu.memory_space<vmem>>, %arg20: memref<1x64xf32, #tpu.memory_space<vmem>>, %arg21: memref<64x32xbf16, #tpu.memory_space<vmem>>, %arg22: memref<1x32xf32, #tpu.memory_space<vmem>>, %arg23: memref<1x32xf32, #tpu.memory_space<vmem>>, %arg24: memref<1x32xf32, #tpu.memory_space<vmem>>, %arg25: memref<1x8x32xf32, #tpu.memory_space<vmem>>) attributes {dimension_semantics = [#tpu.dimension_semantics<parallel>], iteration_bounds = array<i64: 2>, scalar_prefetch = 0 : i64, scratch_operands = 0 : i64, tpu.core_type = #tpu.core_type<tc>, window_params = [{transform_indices = @transform_0, window_bounds = array<i64: 1, 8, 32>}, {transform_indices = @transform_1, window_bounds = array<i64: 1, 8, 32>}, {transform_indices = @transform_2, window_bounds = array<i64: 1, 8, 8>}, {transform_indices = @transform_3, window_bounds = array<i64: 1, 8, 8>}, {pipeline_mode = #tpu.pipeline_mode<synchronous>, transform_indices = @transform_4, window_bounds = array<i64: 32, 32>}, {pipeline_mode = #tpu.pipeline_mode<synchronous>, transform_indices = @transform_5, window_bounds = array<i64: 32, 32>}, {pipeline_mode = #tpu.pipeline_mode<synchronous>, transform_indices = @transform_6, window_bounds = array<i64: 32, 32>}, {pipeline_mode = #tpu.pipeline_mode<synchronous>, transform_indices = @transform_7, window_bounds = array<i64: 32, 32>}, {pipeline_mode = #tpu.pipeline_mode<synchronous>, transform_indices = @transform_8, window_bounds = array<i64: 1, 32>}, {pipeline_mode = #tpu.pipeline_mode<synchronous>, transform_indices = @transform_9, window_bounds = array<i64: 1, 32>}, {pipeline_mode = #tpu.pipeline_mode<synchronous>, transform_indices = @transform_10, window_bounds = array<i64: 1, 32>}, {pipeline_mode = #tpu.pipeline_mode<synchronous>, transform_indices = @transform_11, window_bounds = array<i64: 32, 32>}, {pipeline_mode = #tpu.pipeline_mode<synchronous>, transform_indices = @transform_12, window_bounds = array<i64: 32, 32>}, {pipeline_mode = #tpu.pipeline_mode<synchronous>, transform_indices = @transform_13, window_bounds = array<i64: 32, 32>}, {pipeline_mode = #tpu.pipeline_mode<synchronous>, transform_indices = @transform_14, window_bounds = array<i64: 32, 32>}, {pipeline_mode = #tpu.pipeline_mode<synchronous>, transform_indices = @transform_15, window_bounds = array<i64: 1, 32>}, {pipeline_mode = #tpu.pipeline_mode<synchronous>, transform_indices = @transform_16, window_bounds = array<i64: 1, 32>}, {pipeline_mode = #tpu.pipeline_mode<synchronous>, transform_indices = @transform_17, window_bounds = array<i64: 1, 32>}, {pipeline_mode = #tpu.pipeline_mode<synchronous>, transform_indices = @transform_18, window_bounds = array<i64: 32, 64>}, {pipeline_mode = #tpu.pipeline_mode<synchronous>, transform_indices = @transform_19, window_bounds = array<i64: 1, 64>}, {pipeline_mode = #tpu.pipeline_mode<synchronous>, transform_indices = @transform_20, window_bounds = array<i64: 64, 32>}, {pipeline_mode = #tpu.pipeline_mode<synchronous>, transform_indices = @transform_21, window_bounds = array<i64: 1, 32>}, {pipeline_mode = #tpu.pipeline_mode<synchronous>, transform_indices = @transform_22, window_bounds = array<i64: 1, 32>}, {pipeline_mode = #tpu.pipeline_mode<synchronous>, transform_indices = @transform_23, window_bounds = array<i64: 1, 32>}, {transform_indices = @transform_24, window_bounds = array<i64: 1, 8, 32>}]} {
    %c0 = arith.constant 0 : index
    %c0_0 = arith.constant 0 : index
    %c0_1 = arith.constant 0 : index
    %0 = vector.load %arg1[%c0, %c0_0, %c0_1] : memref<1x8x32xf32, #tpu.memory_space<vmem>>, vector<1x8x32xf32>
    %1 = vector.shape_cast %0 : vector<1x8x32xf32> to vector<8x32xf32>
    %c0_2 = arith.constant 0 : index
    %c0_3 = arith.constant 0 : index
    %c0_4 = arith.constant 0 : index
    %2 = vector.load %arg2[%c0_2, %c0_3, %c0_4] : memref<1x8x32xf32, #tpu.memory_space<vmem>>, vector<1x8x32xf32>
    %3 = vector.shape_cast %2 : vector<1x8x32xf32> to vector<8x32xf32>
    %c0_5 = arith.constant 0 : index
    %c0_6 = arith.constant 0 : index
    %c0_7 = arith.constant 0 : index
    %4 = vector.load %arg3[%c0_5, %c0_6, %c0_7] : memref<1x8x8xf32, #tpu.memory_space<vmem>>, vector<1x8x8xf32>
    %5 = vector.shape_cast %4 : vector<1x8x8xf32> to vector<8x8xf32>
    %c0_8 = arith.constant 0 : index
    %c0_9 = arith.constant 0 : index
    %c0_10 = arith.constant 0 : index
    %6 = vector.load %arg4[%c0_8, %c0_9, %c0_10] : memref<1x8x8xf32, #tpu.memory_space<vmem>>, vector<1x8x8xf32>
    %7 = vector.shape_cast %6 : vector<1x8x8xf32> to vector<8x8xf32>
    %c0_11 = arith.constant 0 : index
    %c0_12 = arith.constant 0 : index
    %8 = vector.load %arg5[%c0_11, %c0_12] : memref<32x32xbf16, #tpu.memory_space<vmem>>, vector<32x32xbf16>
    %c0_13 = arith.constant 0 : index
    %c0_14 = arith.constant 0 : index
    %9 = vector.load %arg6[%c0_13, %c0_14] : memref<32x32xbf16, #tpu.memory_space<vmem>>, vector<32x32xbf16>
    %c0_15 = arith.constant 0 : index
    %c0_16 = arith.constant 0 : index
    %10 = vector.load %arg7[%c0_15, %c0_16] : memref<32x32xbf16, #tpu.memory_space<vmem>>, vector<32x32xbf16>
    %c0_17 = arith.constant 0 : index
    %c0_18 = arith.constant 0 : index
    %11 = vector.load %arg8[%c0_17, %c0_18] : memref<32x32xbf16, #tpu.memory_space<vmem>>, vector<32x32xbf16>
    %c0_19 = arith.constant 0 : index
    %c0_20 = arith.constant 0 : index
    %12 = vector.load %arg9[%c0_19, %c0_20] : memref<1x32xf32, #tpu.memory_space<vmem>>, vector<1x32xf32>
    %13 = arith.truncf %1 : vector<8x32xf32> to vector<8x32xbf16>
    %cst = arith.constant dense<0.000000e+00> : vector<8x32xf32>
    %14 = tpu.matmul %13, %8, %cst {dimension_numbers = #tpu.dot_dimension_numbers<[1], [0], [0], [1], [0, 0, 1, 1], [], []>} : vector<8x32xbf16>, vector<32x32xbf16>, vector<8x32xf32> -> vector<8x32xf32>
    %15 = arith.truncf %1 : vector<8x32xf32> to vector<8x32xbf16>
    %cst_21 = arith.constant dense<0.000000e+00> : vector<8x32xf32>
    %16 = tpu.matmul %15, %9, %cst_21 {dimension_numbers = #tpu.dot_dimension_numbers<[1], [0], [0], [1], [0, 0, 1, 1], [], []>} : vector<8x32xbf16>, vector<32x32xbf16>, vector<8x32xf32> -> vector<8x32xf32>
    %17 = arith.truncf %1 : vector<8x32xf32> to vector<8x32xbf16>
    %cst_22 = arith.constant dense<0.000000e+00> : vector<8x32xf32>
    %18 = tpu.matmul %17, %10, %cst_22 {dimension_numbers = #tpu.dot_dimension_numbers<[1], [0], [0], [1], [0, 0, 1, 1], [], []>} : vector<8x32xbf16>, vector<32x32xbf16>, vector<8x32xf32> -> vector<8x32xf32>
    %cst_23 = arith.constant 1.000000e+00 : f32
    %19 = vector.broadcast %cst_23 : f32 to vector<8x1xf32>
    %20 = vector.extract_strided_slice %14 {offsets = [0, 0], sizes = [8, 8], strides = [1, 1]} : vector<8x32xf32> to vector<8x8xf32>
    %21 = vector.extract_strided_slice %16 {offsets = [0, 0], sizes = [8, 8], strides = [1, 1]} : vector<8x32xf32> to vector<8x8xf32>
    %22 = vector.extract_strided_slice %18 {offsets = [0, 0], sizes = [8, 8], strides = [1, 1]} : vector<8x32xf32> to vector<8x8xf32>
    %cst_24 = arith.constant dense<0.000000e+00> : vector<8x8xf32>
    %23 = tpu.matmul %20, %21, %cst_24 {dimension_numbers = #tpu.dot_dimension_numbers<[1], [1], [0], [0], [0, 0, 1, 0], [], []>} : vector<8x8xf32>, vector<8x8xf32>, vector<8x8xf32> -> vector<8x8xf32>
    %cst_25 = arith.constant 0.000000e+00 : f32
    %24 = vector.broadcast %cst_25 : f32 to vector<8x8xf32>
    %25 = arith.cmpf oeq, %5, %24 : vector<8x8xf32>
    %cst_26 = arith.constant -9.99999944E+27 : f32
    %26 = vector.broadcast %cst_26 : f32 to vector<8x8xf32>
    %27 = arith.select %25, %26, %23 : vector<8x8xi1>, vector<8x8xf32>
    %cst_27 = arith.constant 0.176776692 : f32
    %28 = vector.broadcast %cst_27 : f32 to vector<8x8xf32>
    %29 = arith.mulf %27, %28 : vector<8x8xf32>
    %cst_28 = arith.constant dense<0xFF800000> : vector<8xf32>
    %30 = vector.multi_reduction <maximumf>, %29, %cst_28 [1] : vector<8x8xf32> to vector<8xf32>
    %31 = vector.shape_cast %30 : vector<8xf32> to vector<8x1xf32>
    %32 = vector.broadcast %31 : vector<8x1xf32> to vector<8x8xf32>
    %33 = arith.subf %29, %32 : vector<8x8xf32>
    %34 = math.exp %33 : vector<8x8xf32>
    %cst_29 = arith.constant dense<0.000000e+00> : vector<8xf32>
    %35 = vector.multi_reduction <add>, %34, %cst_29 [1] : vector<8x8xf32> to vector<8xf32>
    %36 = vector.shape_cast %35 : vector<8xf32> to vector<8x1xf32>
    %37 = tpu.reciprocal %36 {approx = true} : vector<8x1xf32> -> vector<8x1xf32>
    %38 = vector.broadcast %37 : vector<8x1xf32> to vector<8x8xf32>
    %39 = arith.mulf %34, %38 : vector<8x8xf32>
    %cst_30 = arith.constant dense<0.000000e+00> : vector<8x1xf32>
    %40 = tpu.matmul %39, %19, %cst_30 {dimension_numbers = #tpu.dot_dimension_numbers<[0], [0], [1], [1], [0, 1, 1, 1], [], []>} : vector<8x8xf32>, vector<8x1xf32>, vector<8x1xf32> -> vector<8x1xf32>
    %41 = vector.broadcast %40 : vector<8x1xf32> to vector<8x8xf32>
    %42 = arith.mulf %22, %41 : vector<8x8xf32>
    %43 = arith.truncf %42 : vector<8x8xf32> to vector<8x8xbf16>
    %44 = vector.extract_strided_slice %11 {offsets = [0, 0], sizes = [8, 32], strides = [1, 1]} : vector<32x32xbf16> to vector<8x32xbf16>
    %cst_31 = arith.constant dense<0.000000e+00> : vector<8x32xf32>
    %45 = tpu.matmul %43, %44, %cst_31 {dimension_numbers = #tpu.dot_dimension_numbers<[1], [0], [0], [1], [0, 0, 1, 1], [], []>} : vector<8x8xbf16>, vector<8x32xbf16>, vector<8x32xf32> -> vector<8x32xf32>
    %46 = vector.extract_strided_slice %14 {offsets = [0, 8], sizes = [8, 8], strides = [1, 1]} : vector<8x32xf32> to vector<8x8xf32>
    %47 = vector.extract_strided_slice %16 {offsets = [0, 8], sizes = [8, 8], strides = [1, 1]} : vector<8x32xf32> to vector<8x8xf32>
    %48 = vector.extract_strided_slice %18 {offsets = [0, 8], sizes = [8, 8], strides = [1, 1]} : vector<8x32xf32> to vector<8x8xf32>
    %cst_32 = arith.constant dense<0.000000e+00> : vector<8x8xf32>
    %49 = tpu.matmul %46, %47, %cst_32 {dimension_numbers = #tpu.dot_dimension_numbers<[1], [1], [0], [0], [0, 0, 1, 0], [], []>} : vector<8x8xf32>, vector<8x8xf32>, vector<8x8xf32> -> vector<8x8xf32>
    %cst_33 = arith.constant 0.000000e+00 : f32
    %50 = vector.broadcast %cst_33 : f32 to vector<8x8xf32>
    %51 = arith.cmpf oeq, %5, %50 : vector<8x8xf32>
    %cst_34 = arith.constant -9.99999944E+27 : f32
    %52 = vector.broadcast %cst_34 : f32 to vector<8x8xf32>
    %53 = arith.select %51, %52, %49 : vector<8x8xi1>, vector<8x8xf32>
    %cst_35 = arith.constant 0.176776692 : f32
    %54 = vector.broadcast %cst_35 : f32 to vector<8x8xf32>
    %55 = arith.mulf %53, %54 : vector<8x8xf32>
    %cst_36 = arith.constant dense<0xFF800000> : vector<8xf32>
    %56 = vector.multi_reduction <maximumf>, %55, %cst_36 [1] : vector<8x8xf32> to vector<8xf32>
    %57 = vector.shape_cast %56 : vector<8xf32> to vector<8x1xf32>
    %58 = vector.broadcast %57 : vector<8x1xf32> to vector<8x8xf32>
    %59 = arith.subf %55, %58 : vector<8x8xf32>
    %60 = math.exp %59 : vector<8x8xf32>
    %cst_37 = arith.constant dense<0.000000e+00> : vector<8xf32>
    %61 = vector.multi_reduction <add>, %60, %cst_37 [1] : vector<8x8xf32> to vector<8xf32>
    %62 = vector.shape_cast %61 : vector<8xf32> to vector<8x1xf32>
    %63 = tpu.reciprocal %62 {approx = true} : vector<8x1xf32> -> vector<8x1xf32>
    %64 = vector.broadcast %63 : vector<8x1xf32> to vector<8x8xf32>
    %65 = arith.mulf %60, %64 : vector<8x8xf32>
    %cst_38 = arith.constant dense<0.000000e+00> : vector<8x1xf32>
    %66 = tpu.matmul %65, %19, %cst_38 {dimension_numbers = #tpu.dot_dimension_numbers<[0], [0], [1], [1], [0, 1, 1, 1], [], []>} : vector<8x8xf32>, vector<8x1xf32>, vector<8x1xf32> -> vector<8x1xf32>
    %67 = vector.broadcast %66 : vector<8x1xf32> to vector<8x8xf32>
    %68 = arith.mulf %48, %67 : vector<8x8xf32>
    %69 = arith.truncf %68 : vector<8x8xf32> to vector<8x8xbf16>
    %70 = vector.extract_strided_slice %11 {offsets = [8, 0], sizes = [8, 32], strides = [1, 1]} : vector<32x32xbf16> to vector<8x32xbf16>
    %cst_39 = arith.constant dense<0.000000e+00> : vector<8x32xf32>
    %71 = tpu.matmul %69, %70, %cst_39 {dimension_numbers = #tpu.dot_dimension_numbers<[1], [0], [0], [1], [0, 0, 1, 1], [], []>} : vector<8x8xbf16>, vector<8x32xbf16>, vector<8x32xf32> -> vector<8x32xf32>
    %72 = arith.addf %45, %71 : vector<8x32xf32>
    %73 = vector.extract_strided_slice %14 {offsets = [0, 16], sizes = [8, 8], strides = [1, 1]} : vector<8x32xf32> to vector<8x8xf32>
    %74 = vector.extract_strided_slice %16 {offsets = [0, 16], sizes = [8, 8], strides = [1, 1]} : vector<8x32xf32> to vector<8x8xf32>
    %75 = vector.extract_strided_slice %18 {offsets = [0, 16], sizes = [8, 8], strides = [1, 1]} : vector<8x32xf32> to vector<8x8xf32>
    %cst_40 = arith.constant dense<0.000000e+00> : vector<8x8xf32>
    %76 = tpu.matmul %73, %74, %cst_40 {dimension_numbers = #tpu.dot_dimension_numbers<[1], [1], [0], [0], [0, 0, 1, 0], [], []>} : vector<8x8xf32>, vector<8x8xf32>, vector<8x8xf32> -> vector<8x8xf32>
    %cst_41 = arith.constant 0.000000e+00 : f32
    %77 = vector.broadcast %cst_41 : f32 to vector<8x8xf32>
    %78 = arith.cmpf oeq, %5, %77 : vector<8x8xf32>
    %cst_42 = arith.constant -9.99999944E+27 : f32
    %79 = vector.broadcast %cst_42 : f32 to vector<8x8xf32>
    %80 = arith.select %78, %79, %76 : vector<8x8xi1>, vector<8x8xf32>
    %cst_43 = arith.constant 0.176776692 : f32
    %81 = vector.broadcast %cst_43 : f32 to vector<8x8xf32>
    %82 = arith.mulf %80, %81 : vector<8x8xf32>
    %cst_44 = arith.constant dense<0xFF800000> : vector<8xf32>
    %83 = vector.multi_reduction <maximumf>, %82, %cst_44 [1] : vector<8x8xf32> to vector<8xf32>
    %84 = vector.shape_cast %83 : vector<8xf32> to vector<8x1xf32>
    %85 = vector.broadcast %84 : vector<8x1xf32> to vector<8x8xf32>
    %86 = arith.subf %82, %85 : vector<8x8xf32>
    %87 = math.exp %86 : vector<8x8xf32>
    %cst_45 = arith.constant dense<0.000000e+00> : vector<8xf32>
    %88 = vector.multi_reduction <add>, %87, %cst_45 [1] : vector<8x8xf32> to vector<8xf32>
    %89 = vector.shape_cast %88 : vector<8xf32> to vector<8x1xf32>
    %90 = tpu.reciprocal %89 {approx = true} : vector<8x1xf32> -> vector<8x1xf32>
    %91 = vector.broadcast %90 : vector<8x1xf32> to vector<8x8xf32>
    %92 = arith.mulf %87, %91 : vector<8x8xf32>
    %cst_46 = arith.constant dense<0.000000e+00> : vector<8x1xf32>
    %93 = tpu.matmul %92, %19, %cst_46 {dimension_numbers = #tpu.dot_dimension_numbers<[0], [0], [1], [1], [0, 1, 1, 1], [], []>} : vector<8x8xf32>, vector<8x1xf32>, vector<8x1xf32> -> vector<8x1xf32>
    %94 = vector.broadcast %93 : vector<8x1xf32> to vector<8x8xf32>
    %95 = arith.mulf %75, %94 : vector<8x8xf32>
    %96 = arith.truncf %95 : vector<8x8xf32> to vector<8x8xbf16>
    %97 = vector.extract_strided_slice %11 {offsets = [16, 0], sizes = [8, 32], strides = [1, 1]} : vector<32x32xbf16> to vector<8x32xbf16>
    %cst_47 = arith.constant dense<0.000000e+00> : vector<8x32xf32>
    %98 = tpu.matmul %96, %97, %cst_47 {dimension_numbers = #tpu.dot_dimension_numbers<[1], [0], [0], [1], [0, 0, 1, 1], [], []>} : vector<8x8xbf16>, vector<8x32xbf16>, vector<8x32xf32> -> vector<8x32xf32>
    %99 = arith.addf %72, %98 : vector<8x32xf32>
    %100 = vector.extract_strided_slice %14 {offsets = [0, 24], sizes = [8, 8], strides = [1, 1]} : vector<8x32xf32> to vector<8x8xf32>
    %101 = vector.extract_strided_slice %16 {offsets = [0, 24], sizes = [8, 8], strides = [1, 1]} : vector<8x32xf32> to vector<8x8xf32>
    %102 = vector.extract_strided_slice %18 {offsets = [0, 24], sizes = [8, 8], strides = [1, 1]} : vector<8x32xf32> to vector<8x8xf32>
    %cst_48 = arith.constant dense<0.000000e+00> : vector<8x8xf32>
    %103 = tpu.matmul %100, %101, %cst_48 {dimension_numbers = #tpu.dot_dimension_numbers<[1], [1], [0], [0], [0, 0, 1, 0], [], []>} : vector<8x8xf32>, vector<8x8xf32>, vector<8x8xf32> -> vector<8x8xf32>
    %cst_49 = arith.constant 0.000000e+00 : f32
    %104 = vector.broadcast %cst_49 : f32 to vector<8x8xf32>
    %105 = arith.cmpf oeq, %5, %104 : vector<8x8xf32>
    %cst_50 = arith.constant -9.99999944E+27 : f32
    %106 = vector.broadcast %cst_50 : f32 to vector<8x8xf32>
    %107 = arith.select %105, %106, %103 : vector<8x8xi1>, vector<8x8xf32>
    %cst_51 = arith.constant 0.176776692 : f32
    %108 = vector.broadcast %cst_51 : f32 to vector<8x8xf32>
    %109 = arith.mulf %107, %108 : vector<8x8xf32>
    %cst_52 = arith.constant dense<0xFF800000> : vector<8xf32>
    %110 = vector.multi_reduction <maximumf>, %109, %cst_52 [1] : vector<8x8xf32> to vector<8xf32>
    %111 = vector.shape_cast %110 : vector<8xf32> to vector<8x1xf32>
    %112 = vector.broadcast %111 : vector<8x1xf32> to vector<8x8xf32>
    %113 = arith.subf %109, %112 : vector<8x8xf32>
    %114 = math.exp %113 : vector<8x8xf32>
    %cst_53 = arith.constant dense<0.000000e+00> : vector<8xf32>
    %115 = vector.multi_reduction <add>, %114, %cst_53 [1] : vector<8x8xf32> to vector<8xf32>
    %116 = vector.shape_cast %115 : vector<8xf32> to vector<8x1xf32>
    %117 = tpu.reciprocal %116 {approx = true} : vector<8x1xf32> -> vector<8x1xf32>
    %118 = vector.broadcast %117 : vector<8x1xf32> to vector<8x8xf32>
    %119 = arith.mulf %114, %118 : vector<8x8xf32>
    %cst_54 = arith.constant dense<0.000000e+00> : vector<8x1xf32>
    %120 = tpu.matmul %119, %19, %cst_54 {dimension_numbers = #tpu.dot_dimension_numbers<[0], [0], [1], [1], [0, 1, 1, 1], [], []>} : vector<8x8xf32>, vector<8x1xf32>, vector<8x1xf32> -> vector<8x1xf32>
    %121 = vector.broadcast %120 : vector<8x1xf32> to vector<8x8xf32>
    %122 = arith.mulf %102, %121 : vector<8x8xf32>
    %123 = arith.truncf %122 : vector<8x8xf32> to vector<8x8xbf16>
    %124 = vector.extract_strided_slice %11 {offsets = [24, 0], sizes = [8, 32], strides = [1, 1]} : vector<32x32xbf16> to vector<8x32xbf16>
    %cst_55 = arith.constant dense<0.000000e+00> : vector<8x32xf32>
    %125 = tpu.matmul %123, %124, %cst_55 {dimension_numbers = #tpu.dot_dimension_numbers<[1], [0], [0], [1], [0, 0, 1, 1], [], []>} : vector<8x8xbf16>, vector<8x32xbf16>, vector<8x32xf32> -> vector<8x32xf32>
    %126 = arith.addf %99, %125 : vector<8x32xf32>
    %127 = vector.broadcast %12 : vector<1x32xf32> to vector<8x32xf32>
    %128 = arith.addf %126, %127 : vector<8x32xf32>
    %c0_56 = arith.constant 0 : index
    %c0_57 = arith.constant 0 : index
    %129 = vector.load %arg10[%c0_56, %c0_57] : memref<1x32xf32, #tpu.memory_space<vmem>>, vector<1x32xf32>
    %c0_58 = arith.constant 0 : index
    %c0_59 = arith.constant 0 : index
    %130 = vector.load %arg11[%c0_58, %c0_59] : memref<1x32xf32, #tpu.memory_space<vmem>>, vector<1x32xf32>
    %131 = arith.addf %128, %1 : vector<8x32xf32>
    %cst_60 = arith.constant dense<0.000000e+00> : vector<8xf32>
    %132 = vector.multi_reduction <add>, %131, %cst_60 [1] : vector<8x32xf32> to vector<8xf32>
    %133 = vector.shape_cast %132 : vector<8xf32> to vector<8x1xf32>
    %cst_61 = arith.constant 3.200000e+01 : f32
    %134 = vector.broadcast %cst_61 : f32 to vector<8x1xf32>
    %135 = arith.divf %133, %134 : vector<8x1xf32>
    %136 = vector.broadcast %135 : vector<8x1xf32> to vector<8x32xf32>
    %137 = arith.subf %131, %136 : vector<8x32xf32>
    %138 = arith.mulf %137, %137 : vector<8x32xf32>
    %cst_62 = arith.constant dense<0.000000e+00> : vector<8xf32>
    %139 = vector.multi_reduction <add>, %138, %cst_62 [1] : vector<8x32xf32> to vector<8xf32>
    %140 = vector.shape_cast %139 : vector<8xf32> to vector<8x1xf32>
    %cst_63 = arith.constant 3.200000e+01 : f32
    %141 = vector.broadcast %cst_63 : f32 to vector<8x1xf32>
    %142 = arith.divf %140, %141 : vector<8x1xf32>
    %143 = vector.broadcast %135 : vector<8x1xf32> to vector<8x32xf32>
    %144 = arith.subf %131, %143 : vector<8x32xf32>
    %cst_64 = arith.constant 9.99999974E-6 : f32
    %145 = vector.broadcast %cst_64 : f32 to vector<8x1xf32>
    %146 = arith.addf %142, %145 : vector<8x1xf32>
    %147 = math.rsqrt %146 : vector<8x1xf32>
    %148 = vector.broadcast %147 : vector<8x1xf32> to vector<8x32xf32>
    %149 = arith.mulf %144, %148 : vector<8x32xf32>
    %150 = vector.broadcast %129 : vector<1x32xf32> to vector<8x32xf32>
    %151 = arith.mulf %149, %150 : vector<8x32xf32>
    %152 = vector.broadcast %130 : vector<1x32xf32> to vector<8x32xf32>
    %153 = arith.addf %151, %152 : vector<8x32xf32>
    %c0_65 = arith.constant 0 : index
    %c0_66 = arith.constant 0 : index
    %154 = vector.load %arg12[%c0_65, %c0_66] : memref<32x32xbf16, #tpu.memory_space<vmem>>, vector<32x32xbf16>
    %c0_67 = arith.constant 0 : index
    %c0_68 = arith.constant 0 : index
    %155 = vector.load %arg13[%c0_67, %c0_68] : memref<32x32xbf16, #tpu.memory_space<vmem>>, vector<32x32xbf16>
    %c0_69 = arith.constant 0 : index
    %c0_70 = arith.constant 0 : index
    %156 = vector.load %arg14[%c0_69, %c0_70] : memref<32x32xbf16, #tpu.memory_space<vmem>>, vector<32x32xbf16>
    %c0_71 = arith.constant 0 : index
    %c0_72 = arith.constant 0 : index
    %157 = vector.load %arg15[%c0_71, %c0_72] : memref<32x32xbf16, #tpu.memory_space<vmem>>, vector<32x32xbf16>
    %c0_73 = arith.constant 0 : index
    %c0_74 = arith.constant 0 : index
    %158 = vector.load %arg16[%c0_73, %c0_74] : memref<1x32xf32, #tpu.memory_space<vmem>>, vector<1x32xf32>
    %159 = arith.truncf %153 : vector<8x32xf32> to vector<8x32xbf16>
    %cst_75 = arith.constant dense<0.000000e+00> : vector<8x32xf32>
    %160 = tpu.matmul %159, %154, %cst_75 {dimension_numbers = #tpu.dot_dimension_numbers<[1], [0], [0], [1], [0, 0, 1, 1], [], []>} : vector<8x32xbf16>, vector<32x32xbf16>, vector<8x32xf32> -> vector<8x32xf32>
    %161 = arith.truncf %3 : vector<8x32xf32> to vector<8x32xbf16>
    %cst_76 = arith.constant dense<0.000000e+00> : vector<8x32xf32>
    %162 = tpu.matmul %161, %155, %cst_76 {dimension_numbers = #tpu.dot_dimension_numbers<[1], [0], [0], [1], [0, 0, 1, 1], [], []>} : vector<8x32xbf16>, vector<32x32xbf16>, vector<8x32xf32> -> vector<8x32xf32>
    %163 = arith.truncf %3 : vector<8x32xf32> to vector<8x32xbf16>
    %cst_77 = arith.constant dense<0.000000e+00> : vector<8x32xf32>
    %164 = tpu.matmul %163, %156, %cst_77 {dimension_numbers = #tpu.dot_dimension_numbers<[1], [0], [0], [1], [0, 0, 1, 1], [], []>} : vector<8x32xbf16>, vector<32x32xbf16>, vector<8x32xf32> -> vector<8x32xf32>
    %cst_78 = arith.constant 1.000000e+00 : f32
    %165 = vector.broadcast %cst_78 : f32 to vector<8x1xf32>
    %166 = vector.extract_strided_slice %160 {offsets = [0, 0], sizes = [8, 8], strides = [1, 1]} : vector<8x32xf32> to vector<8x8xf32>
    %167 = vector.extract_strided_slice %162 {offsets = [0, 0], sizes = [8, 8], strides = [1, 1]} : vector<8x32xf32> to vector<8x8xf32>
    %168 = vector.extract_strided_slice %164 {offsets = [0, 0], sizes = [8, 8], strides = [1, 1]} : vector<8x32xf32> to vector<8x8xf32>
    %cst_79 = arith.constant dense<0.000000e+00> : vector<8x8xf32>
    %169 = tpu.matmul %166, %167, %cst_79 {dimension_numbers = #tpu.dot_dimension_numbers<[1], [1], [0], [0], [0, 0, 1, 0], [], []>} : vector<8x8xf32>, vector<8x8xf32>, vector<8x8xf32> -> vector<8x8xf32>
    %cst_80 = arith.constant 0.000000e+00 : f32
    %170 = vector.broadcast %cst_80 : f32 to vector<8x8xf32>
    %171 = arith.cmpf oeq, %7, %170 : vector<8x8xf32>
    %cst_81 = arith.constant -9.99999944E+27 : f32
    %172 = vector.broadcast %cst_81 : f32 to vector<8x8xf32>
    %173 = arith.select %171, %172, %169 : vector<8x8xi1>, vector<8x8xf32>
    %cst_82 = arith.constant 0.176776692 : f32
    %174 = vector.broadcast %cst_82 : f32 to vector<8x8xf32>
    %175 = arith.mulf %173, %174 : vector<8x8xf32>
    %cst_83 = arith.constant dense<0xFF800000> : vector<8xf32>
    %176 = vector.multi_reduction <maximumf>, %175, %cst_83 [1] : vector<8x8xf32> to vector<8xf32>
    %177 = vector.shape_cast %176 : vector<8xf32> to vector<8x1xf32>
    %178 = vector.broadcast %177 : vector<8x1xf32> to vector<8x8xf32>
    %179 = arith.subf %175, %178 : vector<8x8xf32>
    %180 = math.exp %179 : vector<8x8xf32>
    %cst_84 = arith.constant dense<0.000000e+00> : vector<8xf32>
    %181 = vector.multi_reduction <add>, %180, %cst_84 [1] : vector<8x8xf32> to vector<8xf32>
    %182 = vector.shape_cast %181 : vector<8xf32> to vector<8x1xf32>
    %183 = tpu.reciprocal %182 {approx = true} : vector<8x1xf32> -> vector<8x1xf32>
    %184 = vector.broadcast %183 : vector<8x1xf32> to vector<8x8xf32>
    %185 = arith.mulf %180, %184 : vector<8x8xf32>
    %cst_85 = arith.constant dense<0.000000e+00> : vector<8x1xf32>
    %186 = tpu.matmul %185, %165, %cst_85 {dimension_numbers = #tpu.dot_dimension_numbers<[0], [0], [1], [1], [0, 1, 1, 1], [], []>} : vector<8x8xf32>, vector<8x1xf32>, vector<8x1xf32> -> vector<8x1xf32>
    %187 = vector.broadcast %186 : vector<8x1xf32> to vector<8x8xf32>
    %188 = arith.mulf %168, %187 : vector<8x8xf32>
    %189 = arith.truncf %188 : vector<8x8xf32> to vector<8x8xbf16>
    %190 = vector.extract_strided_slice %157 {offsets = [0, 0], sizes = [8, 32], strides = [1, 1]} : vector<32x32xbf16> to vector<8x32xbf16>
    %cst_86 = arith.constant dense<0.000000e+00> : vector<8x32xf32>
    %191 = tpu.matmul %189, %190, %cst_86 {dimension_numbers = #tpu.dot_dimension_numbers<[1], [0], [0], [1], [0, 0, 1, 1], [], []>} : vector<8x8xbf16>, vector<8x32xbf16>, vector<8x32xf32> -> vector<8x32xf32>
    %192 = vector.extract_strided_slice %160 {offsets = [0, 8], sizes = [8, 8], strides = [1, 1]} : vector<8x32xf32> to vector<8x8xf32>
    %193 = vector.extract_strided_slice %162 {offsets = [0, 8], sizes = [8, 8], strides = [1, 1]} : vector<8x32xf32> to vector<8x8xf32>
    %194 = vector.extract_strided_slice %164 {offsets = [0, 8], sizes = [8, 8], strides = [1, 1]} : vector<8x32xf32> to vector<8x8xf32>
    %cst_87 = arith.constant dense<0.000000e+00> : vector<8x8xf32>
    %195 = tpu.matmul %192, %193, %cst_87 {dimension_numbers = #tpu.dot_dimension_numbers<[1], [1], [0], [0], [0, 0, 1, 0], [], []>} : vector<8x8xf32>, vector<8x8xf32>, vector<8x8xf32> -> vector<8x8xf32>
    %cst_88 = arith.constant 0.000000e+00 : f32
    %196 = vector.broadcast %cst_88 : f32 to vector<8x8xf32>
    %197 = arith.cmpf oeq, %7, %196 : vector<8x8xf32>
    %cst_89 = arith.constant -9.99999944E+27 : f32
    %198 = vector.broadcast %cst_89 : f32 to vector<8x8xf32>
    %199 = arith.select %197, %198, %195 : vector<8x8xi1>, vector<8x8xf32>
    %cst_90 = arith.constant 0.176776692 : f32
    %200 = vector.broadcast %cst_90 : f32 to vector<8x8xf32>
    %201 = arith.mulf %199, %200 : vector<8x8xf32>
    %cst_91 = arith.constant dense<0xFF800000> : vector<8xf32>
    %202 = vector.multi_reduction <maximumf>, %201, %cst_91 [1] : vector<8x8xf32> to vector<8xf32>
    %203 = vector.shape_cast %202 : vector<8xf32> to vector<8x1xf32>
    %204 = vector.broadcast %203 : vector<8x1xf32> to vector<8x8xf32>
    %205 = arith.subf %201, %204 : vector<8x8xf32>
    %206 = math.exp %205 : vector<8x8xf32>
    %cst_92 = arith.constant dense<0.000000e+00> : vector<8xf32>
    %207 = vector.multi_reduction <add>, %206, %cst_92 [1] : vector<8x8xf32> to vector<8xf32>
    %208 = vector.shape_cast %207 : vector<8xf32> to vector<8x1xf32>
    %209 = tpu.reciprocal %208 {approx = true} : vector<8x1xf32> -> vector<8x1xf32>
    %210 = vector.broadcast %209 : vector<8x1xf32> to vector<8x8xf32>
    %211 = arith.mulf %206, %210 : vector<8x8xf32>
    %cst_93 = arith.constant dense<0.000000e+00> : vector<8x1xf32>
    %212 = tpu.matmul %211, %165, %cst_93 {dimension_numbers = #tpu.dot_dimension_numbers<[0], [0], [1], [1], [0, 1, 1, 1], [], []>} : vector<8x8xf32>, vector<8x1xf32>, vector<8x1xf32> -> vector<8x1xf32>
    %213 = vector.broadcast %212 : vector<8x1xf32> to vector<8x8xf32>
    %214 = arith.mulf %194, %213 : vector<8x8xf32>
    %215 = arith.truncf %214 : vector<8x8xf32> to vector<8x8xbf16>
    %216 = vector.extract_strided_slice %157 {offsets = [8, 0], sizes = [8, 32], strides = [1, 1]} : vector<32x32xbf16> to vector<8x32xbf16>
    %cst_94 = arith.constant dense<0.000000e+00> : vector<8x32xf32>
    %217 = tpu.matmul %215, %216, %cst_94 {dimension_numbers = #tpu.dot_dimension_numbers<[1], [0], [0], [1], [0, 0, 1, 1], [], []>} : vector<8x8xbf16>, vector<8x32xbf16>, vector<8x32xf32> -> vector<8x32xf32>
    %218 = arith.addf %191, %217 : vector<8x32xf32>
    %219 = vector.extract_strided_slice %160 {offsets = [0, 16], sizes = [8, 8], strides = [1, 1]} : vector<8x32xf32> to vector<8x8xf32>
    %220 = vector.extract_strided_slice %162 {offsets = [0, 16], sizes = [8, 8], strides = [1, 1]} : vector<8x32xf32> to vector<8x8xf32>
    %221 = vector.extract_strided_slice %164 {offsets = [0, 16], sizes = [8, 8], strides = [1, 1]} : vector<8x32xf32> to vector<8x8xf32>
    %cst_95 = arith.constant dense<0.000000e+00> : vector<8x8xf32>
    %222 = tpu.matmul %219, %220, %cst_95 {dimension_numbers = #tpu.dot_dimension_numbers<[1], [1], [0], [0], [0, 0, 1, 0], [], []>} : vector<8x8xf32>, vector<8x8xf32>, vector<8x8xf32> -> vector<8x8xf32>
    %cst_96 = arith.constant 0.000000e+00 : f32
    %223 = vector.broadcast %cst_96 : f32 to vector<8x8xf32>
    %224 = arith.cmpf oeq, %7, %223 : vector<8x8xf32>
    %cst_97 = arith.constant -9.99999944E+27 : f32
    %225 = vector.broadcast %cst_97 : f32 to vector<8x8xf32>
    %226 = arith.select %224, %225, %222 : vector<8x8xi1>, vector<8x8xf32>
    %cst_98 = arith.constant 0.176776692 : f32
    %227 = vector.broadcast %cst_98 : f32 to vector<8x8xf32>
    %228 = arith.mulf %226, %227 : vector<8x8xf32>
    %cst_99 = arith.constant dense<0xFF800000> : vector<8xf32>
    %229 = vector.multi_reduction <maximumf>, %228, %cst_99 [1] : vector<8x8xf32> to vector<8xf32>
    %230 = vector.shape_cast %229 : vector<8xf32> to vector<8x1xf32>
    %231 = vector.broadcast %230 : vector<8x1xf32> to vector<8x8xf32>
    %232 = arith.subf %228, %231 : vector<8x8xf32>
    %233 = math.exp %232 : vector<8x8xf32>
    %cst_100 = arith.constant dense<0.000000e+00> : vector<8xf32>
    %234 = vector.multi_reduction <add>, %233, %cst_100 [1] : vector<8x8xf32> to vector<8xf32>
    %235 = vector.shape_cast %234 : vector<8xf32> to vector<8x1xf32>
    %236 = tpu.reciprocal %235 {approx = true} : vector<8x1xf32> -> vector<8x1xf32>
    %237 = vector.broadcast %236 : vector<8x1xf32> to vector<8x8xf32>
    %238 = arith.mulf %233, %237 : vector<8x8xf32>
    %cst_101 = arith.constant dense<0.000000e+00> : vector<8x1xf32>
    %239 = tpu.matmul %238, %165, %cst_101 {dimension_numbers = #tpu.dot_dimension_numbers<[0], [0], [1], [1], [0, 1, 1, 1], [], []>} : vector<8x8xf32>, vector<8x1xf32>, vector<8x1xf32> -> vector<8x1xf32>
    %240 = vector.broadcast %239 : vector<8x1xf32> to vector<8x8xf32>
    %241 = arith.mulf %221, %240 : vector<8x8xf32>
    %242 = arith.truncf %241 : vector<8x8xf32> to vector<8x8xbf16>
    %243 = vector.extract_strided_slice %157 {offsets = [16, 0], sizes = [8, 32], strides = [1, 1]} : vector<32x32xbf16> to vector<8x32xbf16>
    %cst_102 = arith.constant dense<0.000000e+00> : vector<8x32xf32>
    %244 = tpu.matmul %242, %243, %cst_102 {dimension_numbers = #tpu.dot_dimension_numbers<[1], [0], [0], [1], [0, 0, 1, 1], [], []>} : vector<8x8xbf16>, vector<8x32xbf16>, vector<8x32xf32> -> vector<8x32xf32>
    %245 = arith.addf %218, %244 : vector<8x32xf32>
    %246 = vector.extract_strided_slice %160 {offsets = [0, 24], sizes = [8, 8], strides = [1, 1]} : vector<8x32xf32> to vector<8x8xf32>
    %247 = vector.extract_strided_slice %162 {offsets = [0, 24], sizes = [8, 8], strides = [1, 1]} : vector<8x32xf32> to vector<8x8xf32>
    %248 = vector.extract_strided_slice %164 {offsets = [0, 24], sizes = [8, 8], strides = [1, 1]} : vector<8x32xf32> to vector<8x8xf32>
    %cst_103 = arith.constant dense<0.000000e+00> : vector<8x8xf32>
    %249 = tpu.matmul %246, %247, %cst_103 {dimension_numbers = #tpu.dot_dimension_numbers<[1], [1], [0], [0], [0, 0, 1, 0], [], []>} : vector<8x8xf32>, vector<8x8xf32>, vector<8x8xf32> -> vector<8x8xf32>
    %cst_104 = arith.constant 0.000000e+00 : f32
    %250 = vector.broadcast %cst_104 : f32 to vector<8x8xf32>
    %251 = arith.cmpf oeq, %7, %250 : vector<8x8xf32>
    %cst_105 = arith.constant -9.99999944E+27 : f32
    %252 = vector.broadcast %cst_105 : f32 to vector<8x8xf32>
    %253 = arith.select %251, %252, %249 : vector<8x8xi1>, vector<8x8xf32>
    %cst_106 = arith.constant 0.176776692 : f32
    %254 = vector.broadcast %cst_106 : f32 to vector<8x8xf32>
    %255 = arith.mulf %253, %254 : vector<8x8xf32>
    %cst_107 = arith.constant dense<0xFF800000> : vector<8xf32>
    %256 = vector.multi_reduction <maximumf>, %255, %cst_107 [1] : vector<8x8xf32> to vector<8xf32>
    %257 = vector.shape_cast %256 : vector<8xf32> to vector<8x1xf32>
    %258 = vector.broadcast %257 : vector<8x1xf32> to vector<8x8xf32>
    %259 = arith.subf %255, %258 : vector<8x8xf32>
    %260 = math.exp %259 : vector<8x8xf32>
    %cst_108 = arith.constant dense<0.000000e+00> : vector<8xf32>
    %261 = vector.multi_reduction <add>, %260, %cst_108 [1] : vector<8x8xf32> to vector<8xf32>
    %262 = vector.shape_cast %261 : vector<8xf32> to vector<8x1xf32>
    %263 = tpu.reciprocal %262 {approx = true} : vector<8x1xf32> -> vector<8x1xf32>
    %264 = vector.broadcast %263 : vector<8x1xf32> to vector<8x8xf32>
    %265 = arith.mulf %260, %264 : vector<8x8xf32>
    %cst_109 = arith.constant dense<0.000000e+00> : vector<8x1xf32>
    %266 = tpu.matmul %265, %165, %cst_109 {dimension_numbers = #tpu.dot_dimension_numbers<[0], [0], [1], [1], [0, 1, 1, 1], [], []>} : vector<8x8xf32>, vector<8x1xf32>, vector<8x1xf32> -> vector<8x1xf32>
    %267 = vector.broadcast %266 : vector<8x1xf32> to vector<8x8xf32>
    %268 = arith.mulf %248, %267 : vector<8x8xf32>
    %269 = arith.truncf %268 : vector<8x8xf32> to vector<8x8xbf16>
    %270 = vector.extract_strided_slice %157 {offsets = [24, 0], sizes = [8, 32], strides = [1, 1]} : vector<32x32xbf16> to vector<8x32xbf16>
    %cst_110 = arith.constant dense<0.000000e+00> : vector<8x32xf32>
    %271 = tpu.matmul %269, %270, %cst_110 {dimension_numbers = #tpu.dot_dimension_numbers<[1], [0], [0], [1], [0, 0, 1, 1], [], []>} : vector<8x8xbf16>, vector<8x32xbf16>, vector<8x32xf32> -> vector<8x32xf32>
    %272 = arith.addf %245, %271 : vector<8x32xf32>
    %273 = vector.broadcast %158 : vector<1x32xf32> to vector<8x32xf32>
    %274 = arith.addf %272, %273 : vector<8x32xf32>
    %c0_111 = arith.constant 0 : index
    %c0_112 = arith.constant 0 : index
    %275 = vector.load %arg17[%c0_111, %c0_112] : memref<1x32xf32, #tpu.memory_space<vmem>>, vector<1x32xf32>
    %c0_113 = arith.constant 0 : index
    %c0_114 = arith.constant 0 : index
    %276 = vector.load %arg18[%c0_113, %c0_114] : memref<1x32xf32, #tpu.memory_space<vmem>>, vector<1x32xf32>
    %277 = arith.addf %274, %153 : vector<8x32xf32>
    %cst_115 = arith.constant dense<0.000000e+00> : vector<8xf32>
    %278 = vector.multi_reduction <add>, %277, %cst_115 [1] : vector<8x32xf32> to vector<8xf32>
    %279 = vector.shape_cast %278 : vector<8xf32> to vector<8x1xf32>
    %cst_116 = arith.constant 3.200000e+01 : f32
    %280 = vector.broadcast %cst_116 : f32 to vector<8x1xf32>
    %281 = arith.divf %279, %280 : vector<8x1xf32>
    %282 = vector.broadcast %281 : vector<8x1xf32> to vector<8x32xf32>
    %283 = arith.subf %277, %282 : vector<8x32xf32>
    %284 = arith.mulf %283, %283 : vector<8x32xf32>
    %cst_117 = arith.constant dense<0.000000e+00> : vector<8xf32>
    %285 = vector.multi_reduction <add>, %284, %cst_117 [1] : vector<8x32xf32> to vector<8xf32>
    %286 = vector.shape_cast %285 : vector<8xf32> to vector<8x1xf32>
    %cst_118 = arith.constant 3.200000e+01 : f32
    %287 = vector.broadcast %cst_118 : f32 to vector<8x1xf32>
    %288 = arith.divf %286, %287 : vector<8x1xf32>
    %289 = vector.broadcast %281 : vector<8x1xf32> to vector<8x32xf32>
    %290 = arith.subf %277, %289 : vector<8x32xf32>
    %cst_119 = arith.constant 9.99999974E-6 : f32
    %291 = vector.broadcast %cst_119 : f32 to vector<8x1xf32>
    %292 = arith.addf %288, %291 : vector<8x1xf32>
    %293 = math.rsqrt %292 : vector<8x1xf32>
    %294 = vector.broadcast %293 : vector<8x1xf32> to vector<8x32xf32>
    %295 = arith.mulf %290, %294 : vector<8x32xf32>
    %296 = vector.broadcast %275 : vector<1x32xf32> to vector<8x32xf32>
    %297 = arith.mulf %295, %296 : vector<8x32xf32>
    %298 = vector.broadcast %276 : vector<1x32xf32> to vector<8x32xf32>
    %299 = arith.addf %297, %298 : vector<8x32xf32>
    %300 = arith.truncf %299 : vector<8x32xf32> to vector<8x32xbf16>
    %c0_120 = arith.constant 0 : index
    %c0_121 = arith.constant 0 : index
    %301 = vector.load %arg19[%c0_120, %c0_121] : memref<32x64xbf16, #tpu.memory_space<vmem>>, vector<32x64xbf16>
    %cst_122 = arith.constant dense<0.000000e+00> : vector<8x64xf32>
    %302 = tpu.matmul %300, %301, %cst_122 {dimension_numbers = #tpu.dot_dimension_numbers<[1], [0], [0], [1], [0, 0, 1, 1], [], []>} : vector<8x32xbf16>, vector<32x64xbf16>, vector<8x64xf32> -> vector<8x64xf32>
    %c0_123 = arith.constant 0 : index
    %c0_124 = arith.constant 0 : index
    %303 = vector.load %arg20[%c0_123, %c0_124] : memref<1x64xf32, #tpu.memory_space<vmem>>, vector<1x64xf32>
    %304 = vector.broadcast %303 : vector<1x64xf32> to vector<8x64xf32>
    %305 = arith.addf %302, %304 : vector<8x64xf32>
    %cst_125 = arith.constant 0.000000e+00 : f32
    %306 = vector.broadcast %cst_125 : f32 to vector<8x64xf32>
    %307 = arith.maximumf %305, %306 : vector<8x64xf32>
    %308 = arith.truncf %307 : vector<8x64xf32> to vector<8x64xbf16>
    %c0_126 = arith.constant 0 : index
    %c0_127 = arith.constant 0 : index
    %309 = vector.load %arg21[%c0_126, %c0_127] : memref<64x32xbf16, #tpu.memory_space<vmem>>, vector<64x32xbf16>
    %cst_128 = arith.constant dense<0.000000e+00> : vector<8x32xf32>
    %310 = tpu.matmul %308, %309, %cst_128 {dimension_numbers = #tpu.dot_dimension_numbers<[1], [0], [0], [1], [0, 0, 1, 1], [], []>} : vector<8x64xbf16>, vector<64x32xbf16>, vector<8x32xf32> -> vector<8x32xf32>
    %c0_129 = arith.constant 0 : index
    %c0_130 = arith.constant 0 : index
    %311 = vector.load %arg22[%c0_129, %c0_130] : memref<1x32xf32, #tpu.memory_space<vmem>>, vector<1x32xf32>
    %312 = vector.broadcast %311 : vector<1x32xf32> to vector<8x32xf32>
    %313 = arith.addf %310, %312 : vector<8x32xf32>
    %c0_131 = arith.constant 0 : index
    %c0_132 = arith.constant 0 : index
    %314 = vector.load %arg23[%c0_131, %c0_132] : memref<1x32xf32, #tpu.memory_space<vmem>>, vector<1x32xf32>
    %c0_133 = arith.constant 0 : index
    %c0_134 = arith.constant 0 : index
    %315 = vector.load %arg24[%c0_133, %c0_134] : memref<1x32xf32, #tpu.memory_space<vmem>>, vector<1x32xf32>
    %316 = arith.addf %313, %299 : vector<8x32xf32>
    %cst_135 = arith.constant dense<0.000000e+00> : vector<8xf32>
    %317 = vector.multi_reduction <add>, %316, %cst_135 [1] : vector<8x32xf32> to vector<8xf32>
    %318 = vector.shape_cast %317 : vector<8xf32> to vector<8x1xf32>
    %cst_136 = arith.constant 3.200000e+01 : f32
    %319 = vector.broadcast %cst_136 : f32 to vector<8x1xf32>
    %320 = arith.divf %318, %319 : vector<8x1xf32>
    %321 = vector.broadcast %320 : vector<8x1xf32> to vector<8x32xf32>
    %322 = arith.subf %316, %321 : vector<8x32xf32>
    %323 = arith.mulf %322, %322 : vector<8x32xf32>
    %cst_137 = arith.constant dense<0.000000e+00> : vector<8xf32>
    %324 = vector.multi_reduction <add>, %323, %cst_137 [1] : vector<8x32xf32> to vector<8xf32>
    %325 = vector.shape_cast %324 : vector<8xf32> to vector<8x1xf32>
    %cst_138 = arith.constant 3.200000e+01 : f32
    %326 = vector.broadcast %cst_138 : f32 to vector<8x1xf32>
    %327 = arith.divf %325, %326 : vector<8x1xf32>
    %328 = vector.broadcast %320 : vector<8x1xf32> to vector<8x32xf32>
    %329 = arith.subf %316, %328 : vector<8x32xf32>
    %cst_139 = arith.constant 9.99999974E-6 : f32
    %330 = vector.broadcast %cst_139 : f32 to vector<8x1xf32>
    %331 = arith.addf %327, %330 : vector<8x1xf32>
    %332 = math.rsqrt %331 : vector<8x1xf32>
    %333 = vector.broadcast %332 : vector<8x1xf32> to vector<8x32xf32>
    %334 = arith.mulf %329, %333 : vector<8x32xf32>
    %335 = vector.broadcast %314 : vector<1x32xf32> to vector<8x32xf32>
    %336 = arith.mulf %334, %335 : vector<8x32xf32>
    %337 = vector.broadcast %315 : vector<1x32xf32> to vector<8x32xf32>
    %338 = arith.addf %336, %337 : vector<8x32xf32>
    %c0_140 = arith.constant 0 : index
    %c0_141 = arith.constant 0 : index
    %c0_142 = arith.constant 0 : index
    %339 = vector.load %arg25[%c0_140, %c0_141, %c0_142] : memref<1x8x32xf32, #tpu.memory_space<vmem>>, vector<1x8x32xf32>
    %340 = vector.shape_cast %339 : vector<1x8x32xf32> to vector<8x32xf32>
    %341 = vector.shape_cast %338 : vector<8x32xf32> to vector<1x8x32xf32>
    tpu.vector_store %arg25[%c0_140, %c0_141, %c0_142], %341 {strides = array<i32>} : memref<1x8x32xf32, #tpu.memory_space<vmem>>, vector<1x8x32xf32>,
    return
  }
  func.func @transform_0(%arg0: i32) -> (i32, i32, i32) {
    %c0_i32 = arith.constant 0 : i32
    %c0_i32_0 = arith.constant 0 : i32
    %c0_i32_1 = arith.constant 0 : i32
    return %arg0, %c0_i32, %c0_i32_0 : i32, i32, i32
  }
  func.func @transform_1(%arg0: i32) -> (i32, i32, i32) {
    %c0_i32 = arith.constant 0 : i32
    %c0_i32_0 = arith.constant 0 : i32
    %c0_i32_1 = arith.constant 0 : i32
    return %arg0, %c0_i32, %c0_i32_0 : i32, i32, i32
  }
  func.func @transform_2(%arg0: i32) -> (i32, i32, i32) {
    %c0_i32 = arith.constant 0 : i32
    %c0_i32_0 = arith.constant 0 : i32
    %c0_i32_1 = arith.constant 0 : i32
    return %arg0, %c0_i32, %c0_i32_0 : i32, i32, i32
  }
  func.func @transform_3(%arg0: i32) -> (i32, i32, i32) {
    %c0_i32 = arith.constant 0 : i32
    %c0_i32_0 = arith.constant 0 : i32
    %c0_i32_1 = arith.constant 0 : i32
    return %arg0, %c0_i32, %c0_i32_0 : i32, i32, i32
  }
  func.func @transform_4(%arg0: i32) -> (i32, i32) {
    %c0_i32 = arith.constant 0 : i32
    %c0_i32_0 = arith.constant 0 : i32
    %c0_i32_1 = arith.constant 0 : i32
    return %c0_i32, %c0_i32_0 : i32, i32
  }
  func.func @transform_5(%arg0: i32) -> (i32, i32) {
    %c0_i32 = arith.constant 0 : i32
    %c0_i32_0 = arith.constant 0 : i32
    %c0_i32_1 = arith.constant 0 : i32
    return %c0_i32, %c0_i32_0 : i32, i32
  }
  func.func @transform_6(%arg0: i32) -> (i32, i32) {
    %c0_i32 = arith.constant 0 : i32
    %c0_i32_0 = arith.constant 0 : i32
    %c0_i32_1 = arith.constant 0 : i32
    return %c0_i32, %c0_i32_0 : i32, i32
  }
  func.func @transform_7(%arg0: i32) -> (i32, i32) {
    %c0_i32 = arith.constant 0 : i32
    %c0_i32_0 = arith.constant 0 : i32
    %c0_i32_1 = arith.constant 0 : i32
    return %c0_i32, %c0_i32_0 : i32, i32
  }
  func.func @transform_8(%arg0: i32) -> (i32, i32) {
    %c0_i32 = arith.constant 0 : i32
    %c0_i32_0 = arith.constant 0 : i32
    %c0_i32_1 = arith.constant 0 : i32
    return %c0_i32, %c0_i32_0 : i32, i32
  }
  func.func @transform_9(%arg0: i32) -> (i32, i32) {
    %c0_i32 = arith.constant 0 : i32
    %c0_i32_0 = arith.constant 0 : i32
    %c0_i32_1 = arith.constant 0 : i32
    return %c0_i32, %c0_i32_0 : i32, i32
  }
  func.func @transform_10(%arg0: i32) -> (i32, i32) {
    %c0_i32 = arith.constant 0 : i32
    %c0_i32_0 = arith.constant 0 : i32
    %c0_i32_1 = arith.constant 0 : i32
    return %c0_i32, %c0_i32_0 : i32, i32
  }
  func.func @transform_11(%arg0: i32) -> (i32, i32) {
    %c0_i32 = arith.constant 0 : i32
    %c0_i32_0 = arith.constant 0 : i32
    %c0_i32_1 = arith.constant 0 : i32
    return %c0_i32, %c0_i32_0 : i32, i32
  }
  func.func @transform_12(%arg0: i32) -> (i32, i32) {
    %c0_i32 = arith.constant 0 : i32
    %c0_i32_0 = arith.constant 0 : i32
    %c0_i32_1 = arith.constant 0 : i32
    return %c0_i32, %c0_i32_0 : i32, i32
  }
  func.func @transform_13(%arg0: i32) -> (i32, i32) {
    %c0_i32 = arith.constant 0 : i32
    %c0_i32_0 = arith.constant 0 : i32
    %c0_i32_1 = arith.constant 0 : i32
    return %c0_i32, %c0_i32_0 : i32, i32
  }
  func.func @transform_14(%arg0: i32) -> (i32, i32) {
    %c0_i32 = arith.constant 0 : i32
    %c0_i32_0 = arith.constant 0 : i32
    %c0_i32_1 = arith.constant 0 : i32
    return %c0_i32, %c0_i32_0 : i32, i32
  }
  func.func @transform_15(%arg0: i32) -> (i32, i32) {
    %c0_i32 = arith.constant 0 : i32
    %c0_i32_0 = arith.constant 0 : i32
    %c0_i32_1 = arith.constant 0 : i32
    return %c0_i32, %c0_i32_0 : i32, i32
  }
  func.func @transform_16(%arg0: i32) -> (i32, i32) {
    %c0_i32 = arith.constant 0 : i32
    %c0_i32_0 = arith.constant 0 : i32
    %c0_i32_1 = arith.constant 0 : i32
    return %c0_i32, %c0_i32_0 : i32, i32
  }
  func.func @transform_17(%arg0: i32) -> (i32, i32) {
    %c0_i32 = arith.constant 0 : i32
    %c0_i32_0 = arith.constant 0 : i32
    %c0_i32_1 = arith.constant 0 : i32
    return %c0_i32, %c0_i32_0 : i32, i32
  }
  func.func @transform_18(%arg0: i32) -> (i32, i32) {
    %c0_i32 = arith.constant 0 : i32
    %c0_i32_0 = arith.constant 0 : i32
    %c0_i32_1 = arith.constant 0 : i32
    return %c0_i32, %c0_i32_0 : i32, i32
  }
  func.func @transform_19(%arg0: i32) -> (i32, i32) {
    %c0_i32 = arith.constant 0 : i32
    %c0_i32_0 = arith.constant 0 : i32
    %c0_i32_1 = arith.constant 0 : i32
    return %c0_i32, %c0_i32_0 : i32, i32
  }
  func.func @transform_20(%arg0: i32) -> (i32, i32) {
    %c0_i32 = arith.constant 0 : i32
    %c0_i32_0 = arith.constant 0 : i32
    %c0_i32_1 = arith.constant 0 : i32
    return %c0_i32, %c0_i32_0 : i32, i32
  }
  func.func @transform_21(%arg0: i32) -> (i32, i32) {
    %c0_i32 = arith.constant 0 : i32
    %c0_i32_0 = arith.constant 0 : i32
    %c0_i32_1 = arith.constant 0 : i32
    return %c0_i32, %c0_i32_0 : i32, i32
  }
  func.func @transform_22(%arg0: i32) -> (i32, i32) {
    %c0_i32 = arith.constant 0 : i32
    %c0_i32_0 = arith.constant 0 : i32
    %c0_i32_1 = arith.constant 0 : i32
    return %c0_i32, %c0_i32_0 : i32, i32
  }
  func.func @transform_23(%arg0: i32) -> (i32, i32) {
    %c0_i32 = arith.constant 0 : i32
    %c0_i32_0 = arith.constant 0 : i32
    %c0_i32_1 = arith.constant 0 : i32
    return %c0_i32, %c0_i32_0 : i32, i32
  }
  func.func @transform_24(%arg0: i32) -> (i32, i32, i32) {
    %c0_i32 = arith.constant 0 : i32
    %c0_i32_0 = arith.constant 0 : i32
    %c0_i32_1 = arith.constant 0 : i32
    return %arg0, %c0_i32, %c0_i32_0 : i32, i32, i32
  }
}

</mosaic_0001>

<bundles_post_ra>
// kernel: tpu_custom_call.1
= control target key start
LH: loop header
LB: loop body
LE: loop exit
PB: predicated region body
PF: predicated region fallthrough
CT: control target
= control target key end

     0   :  { %s4200_s0 = inlined_call_operand.vmem [shape: f32[2,8,32], index: 0, kind: input, shape index: {}]   ;;  %s4201_s1 = inlined_call_operand.vmem [shape: f32[2,8,32], index: 1, kind: input, shape index: {}]   ;;  %s4202_s2 = inlined_call_operand.vmem [shape: f32[2,8,8], index: 2, kind: input, shape index: {}]   ;;  %s4203_s3 = inlined_call_operand.hbm [shape: f32[2,8,8], index: 3, kind: input, shape index: {}]   ;;  %s4204_s4 = inlined_call_operand.hbm [shape: bf16[32,32], index: 4, kind: input, shape index: {}]   ;;  %s4205_s5 = inlined_call_operand.hbm [shape: bf16[32,32], index: 5, kind: input, shape index: {}]   ;;  %s4206_s6 = inlined_call_operand.hbm [shape: bf16[32,32], index: 6, kind: input, shape index: {}]   ;;  %s4207_s7 = inlined_call_operand.hbm [shape: bf16[32,32], index: 7, kind: input, shape index: {}]   ;;  %s4208_s8 = inlined_call_operand.vmem [shape: f32[1,32], index: 8, kind: input, shape index: {}]   ;;  %s4209_s9 = inlined_call_operand.vmem [shape: f32[1,32], index: 9, kind: input, shape index: {}]   ;;  %s4210_s10 = inlined_call_operand.vmem [shape: f32[1,32], index: 10, kind: input, shape index: {}]   ;;  %s4211_s11 = inlined_call_operand.hbm [shape: bf16[32,32], index: 11, kind: input, shape index: {}]   ;;  %s4212_s12 = inlined_call_operand.hbm [shape: bf16[32,32], index: 12, kind: input, shape index: {}]   ;;  %s4213_s13 = inlined_call_operand.hbm [shape: bf16[32,32], index: 13, kind: input, shape index: {}]   ;;  %s4214_s14 = inlined_call_operand.hbm [shape: bf16[32,32], index: 14, kind: input, shape index: {}]   ;;  %s4215_s15 = inlined_call_operand.hbm [shape: f32[1,32], index: 15, kind: input, shape index: {}]   ;;  %s4216_s16 = inlined_call_operand.hbm [shape: f32[1,32], index: 16, kind: input, shape index: {}]   ;;  %s4217_s17 = inlined_call_operand.hbm [shape: f32[1,32], index: 17, kind: input, shape index: {}]   ;;  %s4218_s18 = inlined_call_operand.hbm [shape: bf16[32,64], index: 18, kind: input, shape index: {}]   ;;  %s4219_s19 = inlined_call_operand.hbm [shape: f32[1,64], index: 19, kind: input, shape index: {}]   ;;  %s4220_s20 = inlined_call_operand.vmem [shape: bf16[64,32], index: 20, kind: input, shape index: {}]   ;;  %s4221_s21 = inlined_call_operand.vmem [shape: f32[1,32], index: 21, kind: input, shape index: {}]   ;;  %s4222_s22 = inlined_call_operand.vmem [shape: f32[1,32], index: 22, kind: input, shape index: {}]   ;;  %s4223_s23 = inlined_call_operand.vmem [shape: f32[1,32], index: 23, kind: input, shape index: {}]   ;;  %s4224_s24 = inlined_call_operand.hbm [shape: f32[2,8,32], index: 24, kind: output, shape index: {}]  }
   0x1   :  { %4231 = sst [smem:[#allocation35_spill]] %s4200_s0 }
   0x2   :  { %4232 = sst [smem:[#allocation36_spill]] %s4201_s1 }
   0x3   :  { %4233 = sst [smem:[#allocation37_spill]] %s4202_s2 }
   0x4   :  { %4234 = sst [smem:[#allocation38_spill]] %s4203_s3 }
   0x5   :  { %4235 = sst [smem:[#allocation39_spill]] %s4204_s4 }
   0x6   :  { %4236 = sst [smem:[#allocation40_spill]] %s4205_s5 }
   0x7   :  { %4237 = sst [smem:[#allocation41_spill]] %s4206_s6 }
   0x8   :  { %4238 = sst [smem:[#allocation42_spill]] %s4207_s7 }
   0x9   :  { %4239 = sst [smem:[#allocation43_spill]] %s4208_s8 }
   0xa   :  { %4240 = sst [smem:[#allocation44_spill]] %s4211_s11 }
   0xb   :  { %4241 = sst [smem:[#allocation45_spill]] %s4212_s12 }
   0xc   :  { %4242 = sst [smem:[#allocation46_spill]] %s4213_s13 }
   0xd   :  { %4243 = sst [smem:[#allocation47_spill]] %s4214_s14 }
   0xe   :  { %4244 = sst [smem:[#allocation48_spill]] %s4215_s15 }
   0xf   :  { %4245 = sst [smem:[#allocation49_spill]] %s4220_s20 }
  0x10   :  { %4246 = sst [smem:[#allocation50_spill]] %s4221_s21 }
  0x11   :  { %4247 = sst [smem:[#allocation51_spill]] %s4222_s22 }
  0x12   :  { %4248 = sst [smem:[#allocation52_spill]] %s4223_s23 }
  0x13   :  { %4249 = sst [smem:[#allocation53_spill]] %s4224_s24 }
  0x14   :  { %29 = vsyncpa [#allocation3], 0 }
  0x15   :  { %31 = vsyncpa [#allocation3 + $0x1], 0 }
  0x16   :  { %32 = vsyncpa [#allocation6], 0 }
  0x17   :  { %33 = vsyncpa [#allocation9], 0 }
  0x18   :  { %34 = vsyncpa [#allocation12], 0 }
  0x19   :  { %35 = vsyncpa [#allocation15], 0 }
  0x1a   :  { %36 = vsyncpa [#allocation18], 0 }
  0x1b   :  { %37 = vsyncpa [#allocation21], 0 }
  0x1c   :  { %38 = vsyncpa [#allocation24], 0 }
  0x1d   :  { %39 = vsyncpa [#allocation4], 0 }
  0x1e   :  { %41 = vsyncpa [#allocation4 + $0x1], 0  ;;  %s3738_s5 = smov 0   ;;  %s3740_s26 = smov 0  }
  0x1f   :  { %s3742_s27 = smov 0   ;;  %s3744_s28 = smov 0  }
  0x20 LB: > { %s4250_s29 = sld [smem:[#allocation39_spill]]  ;;  %s3762_s7 = sadd.s32 4294967295, %s3590_s28   ;;  %s3590_s28 = sphi %s3744_s28, %s4280_s28   ;;  %s3586_s27 = sphi %s3742_s27, %s4279_s27   ;;  %s3582_s26 = sphi %s3740_s26, %s4278_s26   ;;  %s3578_s5 = sphi %s3738_s5, %s4277_s5  }
  0x21   : > { %p2667_p0 = scmp.ge.s32.totalorder %s3590_s28, 1  ;;  %p146_p1 = scmp.eq.s32.totalorder %s3762_s7, 0 }
  0x22   : > { %p602_p2 = scmp.lt.s32.totalorder %s3590_s28, 3  ;;  %s3592_s3 = smov [#allocation5]  }
  0x23   : > { %s615_s25 = sshll.u32 %s3592_s3, 4  ;;  %s4252_s1 = sld [smem:[#allocation41_spill]]  ;;  %s616_s25 = int_to_ptr.vmem [resolvable:$true] %s615_s25 }
  0x24   : > { %p3767_p3 = pnand %p2667_p0, %p602_p2  ;;  %s4254_s11 = sld [smem:[#allocation44_spill]] }
  0x25   : > { %s3593_s24 = smov [#allocation8]   ;;  %s4228_s21 = smov 64  }
  0x26   : > { %s613_s0 = sshll.u32 %s4250_s29, 4  ;;  %p2893_p4 = pneg %p3767_p3  ;;  %s614_s0 = int_to_ptr.hbm [resolvable:$true] %s613_s0 }
  0x27   : > { %s643_s22 = sshll.u32 %s3593_s24, 4  ;;  %s3595_s20 = smov 4   ;;  %s644_s22 = int_to_ptr.vmem [resolvable:$true] %s643_s22 }
  0x28   : > { %p3779_p6 = pnand %p2893_p4, %p146_p1  ;;  %s4255_s13 = sld [smem:[#allocation46_spill]] }
  0x29   : > { %s641_s6 = sshll.u32 %s4252_s1, 4  ;;  %s3596_s24 = smov [#allocation11]   ;;  %s642_s6 = int_to_ptr.hbm [resolvable:$true] %s641_s6 }
  0x2a   : > { %s678_s3 = sshll.u32 %s4254_s11, 4  ;;  %s680_s1 = sshll.u32 %s3596_s24, 4  ;;  %s679_s3 = int_to_ptr.hbm [resolvable:$true] %s678_s3  ;;  %s681_s1 = int_to_ptr.vmem [resolvable:$true] %s680_s1 }
  0x2b   : > { %2896 = dma.hbm_to_vmem [thread:$0]  (!%p3779_p6), %s614_s0, 256, %s616_s25, [#allocation6], %s4228_s21, %s4228_s21, %s3595_s20  }
  0x2c   : > { %2902 = dma.hbm_to_vmem [thread:$0]  (!%p3779_p6), %s642_s6, 256, %s644_s22, [#allocation9], %s4228_s21, %s4228_s21, %s3595_s20  }
  0x2d   : > { %2908 = dma.hbm_to_vmem [thread:$0]  (!%p3779_p6), %s679_s3, 256, %s681_s1, [#allocation12], %s4228_s21, %s4228_s21, %s3595_s20  }
  0x2e   : > { %s706_s4 = sshll.u32 %s4255_s13, 4  ;;  %s3597_s0 = smov [#allocation14]   ;;  %s707_s4 = int_to_ptr.hbm [resolvable:$true] %s706_s4 }
  0x2f   : > { %s708_s25 = sshll.u32 %s3597_s0, 4  ;;  %s4256_s15 = sld [smem:[#allocation48_spill]]  ;;  %s709_s25 = int_to_ptr.vmem [resolvable:$true] %s708_s25 }
  0x30   : > { %2914 = dma.hbm_to_vmem [thread:$0]  (!%p3779_p6), %s707_s4, 256, %s709_s25, [#allocation15], %s4228_s21, %s4228_s21, %s3595_s20  }
  0x31   : > { %s759_s23 = sshll.u32 %s4217_s17, 4  ;;  %s3598_s24 = smov [#allocation17]   ;;  %s760_s23 = int_to_ptr.hbm [resolvable:$true] %s759_s23 }
  0x32   : > { %s737_s3 = sshll.u32 %s3598_s24, 4  ;;  %s3599_s11 = smov [#allocation20]   ;;  %s738_s3 = int_to_ptr.vmem [resolvable:$true] %s737_s3 }
  0x33   : > { %s761_s1 = sshll.u32 %s3599_s11, 4  ;;  %s4257_s13 = sld [smem:[#allocation40_spill]]  ;;  %s762_s1 = int_to_ptr.vmem [resolvable:$true] %s761_s1 }
  0x34   : > { %2926 = dma.hbm_to_vmem [thread:$0]  (!%p3779_p6), %s760_s23, 16, %s762_s1, [#allocation21]  }
  0x35   : > { %s735_s22 = sshll.u32 %s4256_s15, 4  ;;  %s4258_s6 = sld [smem:[#allocation42_spill]]  ;;  %s736_s22 = int_to_ptr.hbm [resolvable:$true] %s735_s22 }
  0x36   : > { %2920 = dma.hbm_to_vmem [thread:$0]  (!%p3779_p6), %s736_s22, 16, %s738_s3, [#allocation18]  }
  0x37   : > { %s3600_s24 = smov [#allocation7]   ;;  %s4259_s22 = smov 64  }
  0x38   : > { %s629_s21 = sshll.u32 %s3600_s24, 4  ;;  %s3601_s3 = smov [#allocation10]   ;;  %s630_s21 = int_to_ptr.vmem [resolvable:$true] %s629_s21 }
  0x39   : > { %s627_s15 = sshll.u32 %s4257_s13, 4  ;;  %s657_s13 = sshll.u32 %s3601_s3, 4  ;;  %s628_s15 = int_to_ptr.hbm [resolvable:$true] %s627_s15  ;;  %s658_s13 = int_to_ptr.vmem [resolvable:$true] %s657_s13 }
  0x3a   : > { %2899 = dma.hbm_to_vmem [thread:$0]  (!%p3779_p6), %s628_s15, 256, %s630_s21, [#allocation6], %s4259_s22, %s4259_s22, %s3595_s20  }
  0x3b   : > { %s655_s8 = sshll.u32 %s4258_s6, 4  ;;  %s4260_s12 = sld [smem:[#allocation45_spill]]  ;;  %s656_s8 = int_to_ptr.hbm [resolvable:$true] %s655_s8 }
  0x3c   : > { %2905 = dma.hbm_to_vmem [thread:$0]  (!%p3779_p6), %s656_s8, 256, %s658_s13, [#allocation9], %s4259_s22, %s4259_s22, %s3595_s20  }
  0x3d   : > { %s4261_s14 = sld [smem:[#allocation47_spill]]  ;;  %s3602_s25 = smov [#allocation13]  }
  0x3e   : > { %s694_s15 = sshll.u32 %s3602_s25, 4  ;;  %s3603_s21 = smov [#allocation16]   ;;  %s695_s15 = int_to_ptr.vmem [resolvable:$true] %s694_s15 }
  0x3f   : > { %s722_s6 = sshll.u32 %s3603_s21, 4  ;;  %s747_s8 = sshll.u32 %s4216_s16, 4  ;;  %s723_s6 = int_to_ptr.vmem [resolvable:$true] %s722_s6  ;;  %s748_s8 = int_to_ptr.hbm [resolvable:$true] %s747_s8 }
  0x40   : > { %s770_s0 = sshll.u32 %s4218_s18, 4  ;;  %s3605_s29 = smov [#allocation22]   ;;  %s771_s0 = int_to_ptr.hbm [resolvable:$true] %s770_s0 }
  0x41   : > { %s692_s23 = sshll.u32 %s4260_s12, 4  ;;  %s785_s21 = sshll.u32 %s4219_s19, 4  ;;  %s693_s23 = int_to_ptr.hbm [resolvable:$true] %s692_s23  ;;  %s786_s21 = int_to_ptr.hbm [resolvable:$true] %s785_s21 }
  0x42   : > { %2911 = dma.hbm_to_vmem [thread:$0]  (!%p3779_p6), %s693_s23, 256, %s695_s15, [#allocation12], %s4259_s22, %s4259_s22, %s3595_s20  }
  0x43   : > { %s720_s4 = sshll.u32 %s4261_s14, 4  ;;  %s3604_s23 = smov [#allocation19]   ;;  %s721_s4 = int_to_ptr.hbm [resolvable:$true] %s720_s4 }
  0x44   : > { %2917 = dma.hbm_to_vmem [thread:$0]  (!%p3779_p6), %s721_s4, 256, %s723_s6, [#allocation15], %s4259_s22, %s4259_s22, %s3595_s20  }
  0x45   : > { %s749_s1 = sshll.u32 %s3604_s23, 4  ;;  %s772_s4 = sshll.u32 %s3605_s29, 4  ;;  %s750_s1 = int_to_ptr.vmem [resolvable:$true] %s749_s1  ;;  %s773_s4 = int_to_ptr.vmem [resolvable:$true] %s772_s4 }
  0x46   : > { %2923 = dma.hbm_to_vmem [thread:$0]  (!%p3779_p6), %s748_s8, 16, %s750_s1, [#allocation18]  }
  0x47   : > { %2929 = dma.hbm_to_vmem [thread:$0]  (!%p3779_p6), %s771_s0, 256, %s773_s4, [#allocation21], %s4259_s22, %s4259_s22, %s3595_s20  }
  0x48   : > { %s3606_s6 = smov [#allocation23]   ;;  %s2666_s3 = sadd.s32 4294967294, %s3590_s28  }
  0x49   : > { %s787_s24 = sshll.u32 %s3606_s6, 4  ;;  %s3871_s8 = sadd.s32 1, %s3590_s28   ;;  %s788_s24 = int_to_ptr.vmem [resolvable:$true] %s787_s24 }
  0x4a   : > { %2932 = dma.hbm_to_vmem [thread:$0]  (!%p3779_p6), %s786_s21, 16, %s788_s24, [#allocation24]  }
  0x4b   : > { %s132_s13 = sadd.s32 1, %s3586_s27  ;;  %s129_s11 = ssub.s32 %s3590_s28, %s3871_s8 }
  0x4c   : > { %p139_p7 = scmp.ne.s32.totalorder %s3586_s27, %s3582_s26  ;;  %p130_p8 = scmp.eq.s32.totalorder %s129_s11, 0 }
  0x4d   : > { %p140_p9 = scmp.eq.s32.totalorder %s3590_s28, 0  ;;  %p145_p10 = scmp.ne.s32.totalorder %s3582_s26, %s3578_s5 }
  0x4e   : > { %p589_p11 = scmp.eq.s32.totalorder %s3762_s7, 1  ;;  %p595_p0 = scmp.eq.s32.totalorder %s2666_s3, 1 }
  0x4f   : > { %s3883_s20 = scalar_select %p130_p8, %s3586_s27, %s132_s13  }
  0x50   : > { %p3887_p12 = por %p146_p1, %p145_p10  ;;  %p3891_p13 = por %p589_p11, %p139_p7 }
  0x51   : > { %p141_p2 = por %p140_p9, %p139_p7  ;;  %s831_s0 = sand.u32 1, %s3586_s27  }
  0x52   : > { %p3896_p4 = por %p595_p0, %p145_p10  ;;  %p2954_p6 = scmp.lt.s32.totalorder %s3590_s28, 2 }
  0x53   : > { %s2682_s1 = sshll.u32 %s831_s0, 3  ;;  %s2683_s29 = sshll.u32 %s3590_s28, 3 }
  0x54   : > { %s4265_s15 = sld [smem:[#allocation38_spill]]  ;;  %s835_s24 = scalar_lea.vmem [#allocation2], %s2682_s1 }
  0x55   : > { %s843_s13 = sshll.u32 %s835_s24, 4  ;;  %p3905_p8 = pnand %p2954_p6, %p141_p2  ;;  %s844_s13 = int_to_ptr.vmem [resolvable:$true] %s843_s13 }
  0x56   : > { %s832_s11 = scalar_lea.sflag [#allocation3], %s831_s0 }
  0x57   : > { %p3470_p9 = pneg %p3905_p8 }
  0x5a   : > { %s839_s21 = scalar_lea.hbm %s4265_s15, %s2683_s29  ;;  %s3473_s1 = scalar_lea.hbm %s4265_s15, 16 }
  0x5b   : > { %s841_s6 = sshll.u32 %s839_s21, 4  ;;  %s842_s6 = int_to_ptr.hbm [resolvable:$true] %s841_s6 }
  0x5c   : > { %s3466_s12 = sshra.s32 %s842_s6, 4  ;;  %s3467_s12 = int_to_ptr.hbm [resolvable:$true] %s3466_s12 }
  0x5d   : > { %s3468_s14 = scalar_lea.hbm %s3467_s12, 8  ;;  %p3474_p0 = scmp.lt.s32.totalorder %s3467_s12, %s4265_s15 }
  0x5e   : > { %p3469_p7 = scmp.ne.s32.totalorder %s3467_s12, %s3468_s14  ;;  %p3475_p2 = scmp.lt.s32.totalorder %s3473_s1, %s3468_s14 }
  0x60   : > { %p3471_p10 = pnand %p3470_p9, %p3469_p7  ;;  %p3476_p6 = por %p3475_p2, %p3474_p0 }
  0x62   : > { %p3472_p11 = pneg %p3471_p10 }
  0x64   : > { %p3477_p5 = pnand %p3476_p6, %p3472_p11 }
  0x66   : > { %3480 = shalt.err (!%p3477_p5)
}
  0x67   : > { %2936 = dma.hbm_to_vmem [thread:$0]  (!%p3905_p8), %s842_s6, 128, %s844_s13, %s832_s11  }
  0x68   : > { %852 = sbr.rel (%p3767_p3) target bundleno = 5341 (0x14dd), region = 116  ;;  %s3922_s0 = sand.u32 (!%p3767_p3), 1, %s3582_s26  }
  0x69   : > { %s2685_s24 = sshll.u32 (!%p3767_p3), %s3922_s0, 3  ;;  %s855_s29 = scalar_lea.sflag (!%p3767_p3), [#allocation3], %s3922_s0 }
  0x6a   : > { %s3928_s12 = scalar_lea.vmem (!%p3767_p3), [#allocation2], %s2685_s24 }
  0x6d   : > { %3541 = dma.done.wait (%p3887_p12), %s855_s29, 128  }
  0x6e   : > { %3543 = vsyncadd (%p3887_p12), %s855_s29, 4294967168 }
  0x6f   : > { %3545 = dma.done.wait (%p146_p1), [#allocation6], 512  }
  0x70   : > { %3547 = vsyncadd (%p146_p1), [#allocation6], 4294966784 }
  0x71   : > { %3549 = dma.done.wait (%p146_p1), [#allocation9], 512  }
  0x72   : > { %3551 = vsyncadd (%p146_p1), [#allocation9], 4294966784 }
  0x73   : > { %3553 = dma.done.wait (%p146_p1), [#allocation12], 512  }
  0x74   : > { %3555 = vsyncadd (%p146_p1), [#allocation12], 4294966784 }
  0x75   : > { %3557 = dma.done.wait (%p146_p1), [#allocation15], 512  }
  0x76   : > { %3559 = vsyncadd (%p146_p1), [#allocation15], 4294966784 }
  0x77   : > { %3561 = dma.done.wait (%p146_p1), [#allocation18], 32  }
  0x78   : > { %3563 = vsyncadd (%p146_p1), [#allocation18], 4294967264 }
  0x79   : > { %3565 = dma.done.wait (%p146_p1), [#allocation21], 272  }
  0x7a   : > { %3567 = vsyncadd (%p146_p1), [#allocation21], 4294967024 }
  0x7b   : > { %3569 = dma.done.wait (%p146_p1), [#allocation24], 16  }
  0x7c   : > { %3571 = vsyncadd (%p146_p1), [#allocation24], 4294967280  ;;  %p1001_p3 = scmp.lt.s32.totalorder %s3762_s7, 1  ;;  %s4267_s13 = sld [smem:[#allocation35_spill]]  ;;  %v2820_v0 = vld [vmem:[#allocation5 + $0x8] sm:$0xff]  ;;  %v2822_v1 = vld [vmem:[#allocation7 + $0x8] sm:$0xff] }
  0x7d   : > { %v2819_v2 = vld [vmem:[#allocation5] sm:$0xff]  ;;  %v2821_v3 = vld [vmem:[#allocation7] sm:$0xff]  ;;  %1058 = vmatpush.bf16.msra.mxu0 %v2820_v0  ;;  %1083 = vmatpush.bf16.msra.mxu1 %v2822_v1  ;;  %vm1048_vm0 = vcmask 261120   ;;  %vm1115_vm1 = vcmask 64512   ;;  %s3607_s11 = smov 112   ;;  %s3608_s4 = smov 120  }
  0x7e   : > { %s1002_s14 = scalar_select %p1001_p3, %s3762_s7, 1  ;;  %v3609_v10 = vmov 1.0   ;;  %v2824_v54 = vld [vmem:[#allocation8 + $0x8] sm:$0xff]  ;;  %v2823_v55 = vld [vmem:[#allocation8] sm:$0xff]  ;;  %v3611_v60 = vmov 0   ;;  %vm1327_vm3 = vcmask 1043456  }
  0x7f   : > { %s4268_s21 = sld [smem:[#allocation37_spill]]  ;;  %1108 = vmatpush.bf16.msra.mxu2 %v2824_v54  ;;  %vm2369_vm12 = vcmask 523264   ;;  %s2816_s6 = sshll.u32 %s3762_s7, 3 }
  0x80   : > { %s3964_s30 = sshll.u32 %s1002_s14, 3  ;;  %s3610_s14 = smov 104  }
  0x81   : > { %1059 = vmatpush.bf16.msra.mxu0 %v2819_v2  ;;  %1084 = vmatpush.bf16.msra.mxu1 %v2821_v3  ;;  %s4270_s25 = sld [smem:[#allocation36_spill]]  ;;  %s1000_s7 = scalar_lea.vmem [#allocation25], %s2685_s24 }
  0x82   : > { %s1004_s3 = scalar_lea.vmem %s4267_s13, %s3964_s30  ;;  %s4269_s13 = sld [smem:[#allocation43_spill]] }
  0x83   : > { %v3970_v4 = vld [vmem:[%s1004_s3] sm:$0xff]  ;;  %1109 = vmatpush.bf16.msra.mxu2 %v2823_v55  ;;  %v3612_v55 = vmov 32.0   ;;  %s4272_s2 = sld [smem:[#allocation50_spill]] }
  0x84   : > { %v3974_v5 = vpack.c.bf16 %v3970_v4, %v3970_v4  ;;  %s4274_s1 = sld [smem:[#allocation53_spill]] }
  0x85   : > { %1309 = vmatpush.msrb.mxu0 %v3609_v10  ;;  %s1012_s29 = scalar_lea.vmem %s4268_s21, %s3964_s30 }
  0x86   : > { %2711 = vmatmul.msk.bf16.vlgmr.msra.gmra.mxu0 %vm1048_vm0, %v3974_v5  ;;  %2720 = vmatmul.msk.bf16.vlgmr.msra.gmra.mxu1 %vm1048_vm0, %v3974_v5  ;;  %v3999_v12 = vld [vmem:[%s1012_s29] sm:$0xff]  ;;  %s4275_s29 = sld [smem:[#allocation52_spill]] }
  0x87   : > { %1454 = vmatpush.msra.mxu0 %v3609_v10  ;;  %vm1142_vm2 = vcmp.eq.f32.partialorder %v3999_v12, 0.0  ;;  %2729 = vmatmul.msk.bf16.vlgmr.msra.gmra.mxu2 %vm1048_vm0, %v3974_v5  ;;  %s1008_s21 = scalar_lea.vmem %s4270_s25, %s3964_s30 }
  0x8a   : > { %s2431_s25 = scalar_lea.hbm %s4274_s1, %s2816_s6  ;;  %s3516_s24 = scalar_lea.hbm %s4274_s1, 16 }
 0x103   : > { %v3980_v6 = vpop.f32.mrf.mxu0  ;;  %v1086_v7 = vpop.f32.mrf.mxu1 }
 0x104   : > { %1365 = vrot.lane.b32.xlu2 %v1086_v7, %s3607_s11  ;;  %1220 = vrot.lane.b32.xlu1 %v1086_v7, %s3608_s4 }
 0x105   : > { %2730 = vmatpush.xpose.msk.msra.mxu3 %vm1115_vm1, %v1086_v7 }
 0x108   : > { %2731 = vmatmul.msk.f32.vlgmr.msra.gmra.mxu3 %vm1115_vm1, %v3980_v6 }
 0x109   : > { %1206 = vmatpush.msrb.mxu3 %v3609_v10 }
 0x10a   : > { %v1111_v61 = vpop.f32.mrf.mxu2 }
 0x10b   : > { %v1063_v8 = vpop.f32.mrf.mxu0  ;;  %v1088_v9 = vpop.f32.mrf.mxu1 }
 0x10c   : > { %1363 = vrot.lane.b32.xlu2 %v3980_v6, %s3607_s11  ;;  %1218 = vrot.lane.b32.xlu1 %v3980_v6, %s3608_s4 }
 0x112   : > { %v1113_v63 = vpop.f32.mrf.mxu2 }
 0x15e   : > { %v1366_v26 = vpop.permute.xlu2 %1365 }
 0x166   : > { %v1364_v28 = vpop.permute.xlu2 %1363 }
 0x176   : > { %v1221_v11 = vpop.permute.xlu1 %1220 }
 0x177   : > { %2733 = vmatpush.xpose.msk.msra.mxu3 %vm1115_vm1, %v1221_v11 }
 0x17e   : > { %v1219_v27 = vpop.permute.xlu1 %1218 }
 0x18b   : > { %v1139_v13 = vpop.f32.mrf.mxu3 }
 0x18c   : > { %v1143_v14 = vsel %vm1142_vm2, -1e+28, %v1139_v13 }
 0x18d   : > { %v1144_v15 = vmul.f32 0.17677669, %v1143_v14 }
 0x18f   : > { %v1145_v16 = vsel %vm1115_vm1, %v1144_v15, -inf }
 0x190   : > { %1146 = vmax.xlane.f32.xlu0 %v1145_v16  ;;  %v1032_v16 = vld [vmem:[#allocation10 + $0x8] sm:$0xf] }
 0x191   : > { %v1473_v12 = vsel %vm1327_vm3, %v1032_v16, 0 }
 0x203   : > { %v1147_v17 = vpop.xlane.xlu0 %1146 }
 0x204   : > { %v1148_v18 = vsub.f32 %v1144_v15, %v1147_v17 }
 0x206   : > { %v1149_v19 = vmul.f32 1.442695, %v1148_v18 }
 0x208   : > { %3036 = vpow2.f32 %v1149_v19 }
 0x20e   : > { %v3037_v20 = vpop.eup %3036 }
 0x20f   : > { %v1151_v21 = vsel %vm1115_vm1, %v3037_v20, 0.0 }
 0x210   : > { %1152 = vadd.xlane.f32.xlu0 %v1151_v21 }
 0x283   : > { %v1153_v22 = vpop.xlane.xlu0 %1152 }
 0x284   : > { %3038 = vrcp.f32 %v1153_v22 }
 0x28a   : > { %v3039_v23 = vpop.eup %3038 }
 0x28b   : > { %v1155_v24 = vmul.f32 %v3039_v23, %v3037_v20 }
 0x28d   : > { %1156 = vxpose.xlu0.b32.start.end [1/1] (short) (narrow) %v1155_v24, 8 }
 0x331   : > { %v1172_v25 = vpop.trf.xlu0 }
 0x332   : > { %2732 = vmatmul.msk.f32.vlgmr.msrb.gmra.mxu3 %vm1115_vm1, %v1172_v25 }
 0x333   : > { %2738 = vmatpush.xpose.msk.msrb.mxu3 %vm1115_vm1, %v1366_v26 }
 0x33a   : > { %2734 = vmatmul.msk.f32.vlgmr.msra.gmra.mxu3 %vm1115_vm1, %v1219_v27 }
 0x33b   : > { %1482 = vmatpush.bf16.msra.mxu3 %v1473_v12 }
 0x342   : > { %2739 = vmatmul.msk.f32.vlgmr.msrb.gmra.mxu3 %vm1115_vm1, %v1364_v28  ;;  %v1030_v28 = vld [vmem:[#allocation10] sm:$0xf] }
 0x343   : > { %1580 = vmatpush.msrb.mxu3 %v3609_v10 }
 0x3b5   : > { %v4010_v29 = vpop.f32.mrf.mxu3 }
 0x3bd   : > { %v1243_v30 = vpop.f32.mrf.mxu3 }
 0x3be   : > { %v1246_v31 = vsel %vm1142_vm2, -1e+28, %v1243_v30  ;;  %v1348_v30 = vsel %vm1327_vm3, %v1030_v28, 0 }
 0x3bf   : > { %v1247_v32 = vmul.f32 0.17677669, %v1246_v31  ;;  %1357 = vmatpush.bf16.msrb.mxu2 %v1348_v30  ;;  %v1031_v31 = vld [vmem:[#allocation10 + $0x4] sm:$0xf] }
 0x3c1   : > { %v1248_v33 = vsel %vm1115_vm1, %v1247_v32, -inf }
 0x3c2   : > { %1249 = vmax.xlane.f32.xlu1 %v1248_v33  ;;  %v1033_v33 = vld [vmem:[#allocation10 + $0xc] sm:$0xf] }
 0x3c5   : > { %v1388_v34 = vpop.f32.mrf.mxu3 }
 0x3c6   : > { %v1391_v35 = vsel %vm1142_vm2, -1e+28, %v1388_v34  ;;  %v1599_v34 = vsel %vm1327_vm3, %v1033_v33, 0 }
 0x3c7   : > { %v1392_v36 = vmul.f32 0.17677669, %v1391_v35  ;;  %1608 = vmatpush.bf16.msra.mxu2 %v1599_v34 }
 0x3c9   : > { %v1393_v37 = vsel %vm1115_vm1, %v1392_v36, -inf }
 0x3ca   : > { %1394 = vmax.xlane.f32.xlu2 %v1393_v37 }
 0x3db   : > { %1491 = vrot.lane.b32.xlu1 %v1086_v7, %s3610_s14 }
 0x435   : > { %v1250_v38 = vpop.xlane.xlu1 %1249 }
 0x436   : > { %v1251_v39 = vsub.f32 %v1247_v32, %v1250_v38  ;;  %v1329_v32 = vsel %vm1327_vm3, %v1031_v31, 0 }
 0x437   : > { %1338 = vmatpush.bf16.msrb.mxu1 %v1329_v32 }
 0x438   : > { %v1252_v40 = vmul.f32 1.442695, %v1251_v39 }
 0x43a   : > { %3040 = vpow2.f32 %v1252_v40 }
 0x43d   : > { %v1395_v41 = vpop.xlane.xlu2 %1394 }
 0x43e   : > { %v1396_v42 = vsub.f32 %v1392_v36, %v1395_v41 }
 0x440   : > { %v3041_v43 = vpop.eup %3040  ;;  %v1397_v44 = vmul.f32 1.442695, %v1396_v42 }
 0x441   : > { %v1254_v45 = vsel %vm1115_vm1, %v3041_v43, 0.0 }
 0x442   : > { %3042 = vpow2.f32 %v1397_v44  ;;  %1255 = vadd.xlane.f32.xlu0 %v1254_v45 }
 0x448   : > { %v3043_v46 = vpop.eup %3042 }
 0x449   : > { %v1399_v47 = vsel %vm1115_vm1, %v3043_v46, 0.0 }
 0x44a   : > { %1400 = vadd.xlane.f32.xlu2 %v1399_v47 }
 0x44d   : > { %v1492_v56 = vpop.permute.xlu1 %1491 }
 0x462   : > { %1489 = vrot.lane.b32.xlu2 %v3980_v6, %s3610_s14 }
 0x4b5   : > { %v1256_v48 = vpop.xlane.xlu0 %1255 }
 0x4b6   : > { %3044 = vrcp.f32 %v1256_v48  ;;  %v3026_v48 = vld [vmem:[%s4269_s13] ss:$0 sm:$0xff] }
 0x4bc   : > { %v3045_v49 = vpop.eup %3044 }
 0x4bd   : > { %v1401_v50 = vpop.xlane.xlu2 %1400  ;;  %v1258_v51 = vmul.f32 %v3045_v49, %v3041_v43 }
 0x4be   : > { %3046 = vrcp.f32 %v1401_v50 }
 0x4bf   : > { %1259 = vxpose.xlu1.b32.start.end [1/1] (short) (narrow) %v1258_v51, 8 }
 0x4c4   : > { %v3047_v52 = vpop.eup %3046 }
 0x4c5   : > { %v1403_v53 = vmul.f32 %v3047_v52, %v3043_v46  ;;  %v1490_v57 = vpop.permute.xlu2 %1489 }
 0x4c7   : > { %1404 = vxpose.xlu2.b32.start.end [1/1] (short) (narrow) %v1403_v53, 8 }
 0x512   : > { %3023 = vset.pattern.permute.xlu1 %v3611_v60 }
 0x560   : > { %v1420_v59 = vpop.trf.xlu2 }
 0x563   : > { %v1275_v58 = vpop.trf.xlu1 }
 0x564   : > { %2735 = vmatmul.msk.f32.vlgmr.msrb.gmra.mxu0 %vm1115_vm1, %v1275_v58  ;;  %v2827_v58 = vld [vmem:[#allocation13] sm:$0xff] }
 0x565   : > { %2742 = vmatpush.xpose.msk.msrb.mxu0 %vm1115_vm1, %v1492_v56  ;;  %v2828_v56 = vld [vmem:[#allocation13 + $0x8] sm:$0xff] }
 0x566   : > { %1727 = vmatpush.bf16.msra.mxu1 %v2828_v56 }
 0x56a   : > { %1728 = vmatpush.bf16.msra.mxu1 %v2827_v58 }
 0x56c   : > { %2740 = vmatmul.msk.f32.vlgmr.msra.gmra.mxu0 %vm1115_vm1, %v1420_v59 }
 0x574   : > { %2743 = vmatmul.msk.f32.vlgmr.msrb.gmra.mxu0 %vm1115_vm1, %v1490_v57  ;;  %v1015_v57 = vld [vmem:[%s1008_s21] sm:$0xff] }
 0x5e1   : > { %v1311_v62 = vpop.f32.mrf.mxu0 }
 0x5e9   : > { %v1456_v0 = vpop.f32.mrf.mxu0 }
 0x5ea   : > { %1461 = vperm.xlu1 %3023, %v1456_v0  }
 0x5f1   : > { %v1514_v1 = vpop.f32.mrf.mxu0 }
 0x5f2   : > { %v1517_v2 = vsel %vm1142_vm2, -1e+28, %v1514_v1 }
 0x5f3   : > { %v1518_v3 = vmul.f32 0.17677669, %v1517_v2 }
 0x5f5   : > { %v1519_v5 = vsel %vm1115_vm1, %v1518_v3, -inf }
 0x5f6   : > { %1520 = vmax.xlane.f32.xlu2 %v1519_v5 }
 0x65c   : > { %v1462_v13 = vpop.permute.xlu1 %1461 }
 0x65d   : > { %v1464_v14 = vmul.f32 %v1462_v13, %v1111_v61 }
 0x65f   : > { %v1465_v15 = vpack.c.bf16 %v1464_v14, %v1464_v14 }
 0x669   : > { %v1521_v6 = vpop.xlane.xlu2 %1520 }
 0x66a   : > { %v1522_v7 = vsub.f32 %v1518_v3, %v1521_v6 }
 0x66c   : > { %v1523_v8 = vmul.f32 1.442695, %v1522_v7 }
 0x66e   : > { %3048 = vpow2.f32 %v1523_v8  ;;  %v2826_v8 = vld [vmem:[#allocation11 + $0x8] sm:$0xff] }
 0x66f   : > { %1698 = vmatpush.bf16.msra.mxu0 %v2826_v8 }
 0x674   : > { %v3049_v9 = vpop.eup %3048 }
 0x675   : > { %v1525_v11 = vsel %vm1115_vm1, %v3049_v9, 0.0 }
 0x676   : > { %1526 = vadd.xlane.f32.xlu0 %v1525_v11 }
 0x68a   : > { %1467 = vrot.lane.b32.xlu0 %v1465_v15, %s3607_s11 }
 0x6e9   : > { %v1527_v17 = vpop.xlane.xlu0 %1526 }
 0x6ea   : > { %3050 = vrcp.f32 %v1527_v17 }
 0x6eb   : > { %3052 = vrcp.f32 %v3612_v55 }
 0x6f0   : > { %v3051_v18 = vpop.eup %3050 }
 0x6f1   : > { %v1529_v19 = vmul.f32 %v3051_v18, %v3049_v9  ;;  %v3053_v59 = vpop.eup %3052  ;;  %v2825_v9 = vld [vmem:[#allocation11] sm:$0xff] }
 0x6f2   : > { %vm1630_vm4 = vweird.f32 %v3053_v59  ;;  %1699 = vmatpush.bf16.msra.mxu0 %v2825_v9 }
 0x6f3   : > { %1530 = vxpose.xlu0.b32.start.end [1/1] (short) (narrow) %v1529_v19, 8 }
 0x6f6   : > { %1849 = vmatpush.msrb.mxu0 %v3609_v10 }
 0x6fc   : > { %v1468_v20 = vpop.permute.xlu0 %1467 }
 0x6fd   : > { %2741 = vmatmul.msk.bf16.vlgmr.msra.gmra.mxu3 %vm1115_vm1, %v1468_v20 }
 0x75a   : > { %3024 = vset.pattern.permute.xlu0 %v3611_v60 }
 0x761   : > { %1316 = vperm.xlu0 %3024, %v1311_v62   ;;  %v1626_v62 = vmul.f32 32.0, %v3053_v59 }
 0x780   : > { %v1484_v21 = vpop.f32.mrf.mxu3 }
 0x788   : > { %v1486_v22 = vpop.f32.mrf.mxu3 }
 0x789   : > { %v3027_v22 = vld [vmem:[%s4209_s9] ss:$0 sm:$0xff] }
 0x797   : > { %v1546_v23 = vpop.trf.xlu0 }
 0x798   : > { %2744 = vmatmul.msk.f32.vlgmr.msrb.gmra.mxu3 %vm1115_vm1, %v1546_v23 }
 0x7d3   : > { %v1317_v25 = vpop.permute.xlu0 %1316 }
 0x7d4   : > { %v1319_v26 = vmul.f32 %v1317_v25, %v1111_v61 }
 0x7d6   : > { %v1320_v27 = vpack.c.bf16 %v1319_v26, %v1319_v26 }
 0x81b   : > { %v1582_v24 = vpop.f32.mrf.mxu3 }
 0x81c   : > { %1587 = vperm.xlu1 %3023, %v1582_v24   ;;  %v3028_v24 = vld [vmem:[%s4210_s10] ss:$0 sm:$0xff] }
 0x824   : > { %1213 = vperm.xlu1 %3023, %v4010_v29  }
 0x82c   : > { %1322 = vrot.lane.b32.xlu1 %v1320_v27, %s3608_s4 }
 0x88e   : > { %v1588_v35 = vpop.permute.xlu1 %1587 }
 0x88f   : > { %v1590_v36 = vmul.f32 %v1588_v35, %v1111_v61 }
 0x891   : > { %v1591_v37 = vpack.c.bf16 %v1590_v36, %v1590_v36  ;;  %v1017_v36 = vld [vmem:[%s3928_s12] sm:$0xff]  ;;  %s2421_s12 = scalar_lea.sflag [#allocation4], %s3922_s0 }
 0x892   : > { %vm1785_vm8 = vcmp.eq.f32.partialorder %v1017_v36, 0.0 }
 0x893   : > { %1593 = vrot.lane.b32.xlu2 %v1591_v37, %s3610_s14 }
 0x896   : > { %v1214_v29 = vpop.permute.xlu1 %1213 }
 0x897   : > { %v1216_v38 = vmul.f32 %v1214_v29, %v1111_v61  ;;  %v4058_v61 = vpack.c.bf16 %v1015_v57, %v1015_v57 }
 0x899   : > { %v1217_v39 = vpack.c.bf16 %v1216_v38, %v1216_v38 }
 0x89b   : > { %2737 = vmatmul.msk.bf16.vlgmr.msrb.gmra.mxu2 %vm1115_vm1, %v1217_v39 }
 0x89e   : > { %v1323_v40 = vpop.permute.xlu1 %1322 }
 0x89f   : > { %2736 = vmatmul.msk.bf16.vlgmr.msrb.gmra.mxu1 %vm1115_vm1, %v1323_v40 }
 0x8af   : > { %2763 = vmatmul.msk.bf16.vlgmr.msra.gmra.mxu1 %vm1048_vm0, %v4058_v61 }
 0x8ed   : > { %v1594_v41 = vpop.permute.xlu2 %1593 }
 0x8ee   : > { %2745 = vmatmul.msk.bf16.vlgmr.msra.gmra.mxu2 %vm1115_vm1, %v1594_v41 }
 0x91c   : > { %v1340_v42 = vpop.f32.mrf.mxu1 }
 0x91e   : > { %v1359_v43 = vpop.f32.mrf.mxu2 }
 0x91f   : > { %v1360_v44 = vadd.f32 %v1359_v43, %v1340_v42 }
 0x921   : > { %v1488_v47 = vadd.f32 %v1484_v21, %v1360_v44 }
 0x924   : > { %v1342_v45 = vpop.f32.mrf.mxu1 }
 0x926   : > { %v1361_v46 = vpop.f32.mrf.mxu2 }
 0x92c   : > { %v1730_v11 = vpop.f32.mrf.mxu1 }
 0x92d   : > { %2773 = vmatpush.xpose.msk.msrb.mxu2 %vm1115_vm1, %v1730_v11 }
 0x931   : > { %1952 = vmatpush.msra.mxu2 %v3609_v10 }
 0x934   : > { %v1732_v16 = vpop.f32.mrf.mxu1 }
 0x971   : > { %v1610_v49 = vpop.f32.mrf.mxu2 }
 0x972   : > { %v1614_v50 = vadd.f32 %v1610_v49, %v1488_v47 }
 0x974   : > { %v1618_v51 = vadd.f32 %v3026_v48, %v1614_v50 }
 0x976   : > { %v1621_v52 = vadd.f32 %v1618_v51, %v3970_v4  ;;  %v1627_v4 = vsub.f32 1.0, %v1626_v62 }
 0x978   : > { %v1622_v53 = vsel %vm1048_vm0, %v1621_v52, 0.0  ;;  %v1628_v63 = vmul.f32 %v3053_v59, %v1627_v4 }
 0x979   : > { %v1612_v54 = vpop.f32.mrf.mxu2  ;;  %1623 = vadd.xlane.f32.xlu1 %v1622_v53 }
 0x97a   : > { %v1629_v0 = vadd.f32 %v3053_v59, %v1628_v63  ;;  %v2830_v63 = vld [vmem:[#allocation14 + $0x8] sm:$0xff] }
 0x97b   : > { %1752 = vmatpush.bf16.msra.mxu3 %v2830_v63 }
 0x97c   : > { %v4062_v1 = vsel %vm1630_vm4, %v3053_v59, %v1629_v0  ;;  %v2829_v0 = vld [vmem:[#allocation14] sm:$0xff] }
 0x97f   : > { %1753 = vmatpush.bf16.msra.mxu3 %v2829_v0 }
 0x982   : > { %2772 = vmatmul.msk.bf16.vlgmr.msra.gmra.mxu3 %vm1048_vm0, %v4058_v61 }
 0x992   : > { %1863 = vrot.lane.b32.xlu1 %v1730_v11, %s3608_s4 }
 0x99a   : > { %2007 = vrot.lane.b32.xlu1 %v1730_v11, %s3607_s11 }
 0x9ec   : > { %v1624_v2 = vpop.xlane.xlu1 %1623 }
 0x9ed   : > { %v1632_v3 = vmul.f32 %v4062_v1, %v1624_v2 }
 0x9ef   : > { %v1633_v5 = vsub.f32 %v1621_v52, %v1632_v3 }
 0x9f1   : > { %v1634_v6 = vmul.f32 %v1633_v5, %v1633_v5 }
 0x9f3   : > { %v1635_v7 = vsel %vm1048_vm0, %v1634_v6, 0.0 }
 0x9f4   : > { %1636 = vadd.xlane.f32.xlu2 %v1635_v7 }
 0xa04   : > { %v1864_v30 = vpop.permute.xlu1 %1863 }
 0xa05   : > { %2776 = vmatpush.xpose.msk.msrb.mxu1 %vm1115_vm1, %v1864_v30  ;;  %v4106_v7 = vpop.f32.mrf.mxu3 }
 0xa0c   : > { %v2008_v33 = vpop.permute.xlu1 %2007 }
 0xa0d   : > { %2781 = vmatpush.xpose.msk.msra.mxu1 %vm1115_vm1, %v2008_v33  ;;  %v1757_v8 = vpop.f32.mrf.mxu3 }
 0xa67   : > { %v1637_v13 = vpop.xlane.xlu2 %1636 }
 0xa68   : > { %v1638_v14 = vmul.f32 %v1637_v13, %v4062_v1 }
 0xa6a   : > { %v1639_v15 = vadd.f32 1e-05, %v1638_v14 }
 0xa6c   : > { %3054 = vrsqrt.f32 %v1639_v15  ;;  %vm1646_vm6 = vweird.f32 %v1639_v15 }
 0xa72   : > { %v3055_v12 = vpop.eup %3054 }
 0xa73   : > { %v1641_v17 = vmul.f32 %v3055_v12, %v1639_v15  ;;  %vm1647_vm5 = vweird.f32 %v3055_v12 }
 0xa74   : > { %vm1648_vm7 = vmor %vm1646_vm6, %vm1647_vm5 }
 0xa75   : > { %v1642_v18 = vmul.f32 %v3055_v12, %v1641_v17 }
 0xa77   : > { %v1643_v19 = vmul.f32 0.5, %v1642_v18 }
 0xa79   : > { %v1644_v20 = vsub.f32 1.5, %v1643_v19 }
 0xa7b   : > { %v1645_v21 = vmul.f32 %v3055_v12, %v1644_v20  ;;  %v1672_v20 = vld [vmem:[#allocation16 + $0x4] sm:$0xf] }
 0xa7d   : > { %v1649_v23 = vsel %vm1648_vm7, %v3055_v12, %v1645_v21  ;;  %v1971_v21 = vsel %vm1327_vm3, %v1672_v20, 0 }
 0xa7e   : > { %v1650_v25 = vmul.f32 %v1649_v23, %v1633_v5  ;;  %1980 = vmatpush.bf16.msrb.mxu3 %v1971_v21 }
 0xa80   : > { %v1654_v26 = vmul.f32 %v3027_v22, %v1650_v25 }
 0xa82   : > { %v4078_v27 = vadd.f32 %v3028_v24, %v1654_v26  ;;  %2222 = vmatpush.msra.mxu3 %v3609_v10 }
 0xa84   : > { %v1676_v28 = vpack.c.bf16 %v4078_v27, %v4078_v27 }
 0xa86   : > { %2754 = vmatmul.msk.bf16.vlgmr.msra.gmra.mxu0 %vm1048_vm0, %v1676_v28 }
 0xb03   : > { %v1701_v31 = vpop.f32.mrf.mxu0 }
 0xb04   : > { %1861 = vrot.lane.b32.xlu2 %v1701_v31, %s3608_s4  ;;  %2005 = vrot.lane.b32.xlu1 %v1701_v31, %s3607_s11 }
 0xb05   : > { %2774 = vmatmul.msk.f32.vlgmr.msrb.gmra.mxu2 %vm1115_vm1, %v1701_v31 }
 0xb06   : > { %2096 = vmatpush.msrb.mxu2 %v3609_v10 }
 0xb0b   : > { %v1703_v32 = vpop.f32.mrf.mxu0 }
 0xb5e   : > { %v1862_v34 = vpop.permute.xlu2 %1861 }
 0xb5f   : > { %2777 = vmatmul.msk.f32.vlgmr.msrb.gmra.mxu1 %vm1115_vm1, %v1862_v34 }
 0xb76   : > { %v2006_v35 = vpop.permute.xlu1 %2005 }
 0xb77   : > { %2782 = vmatmul.msk.f32.vlgmr.msra.gmra.mxu1 %vm1115_vm1, %v2006_v35 }
 0xb88   : > { %v1782_v5 = vpop.f32.mrf.mxu2 }
 0xb89   : > { %v1786_v61 = vsel %vm1785_vm8, -1e+28, %v1782_v5 }
 0xb8a   : > { %v1787_v16 = vmul.f32 0.17677669, %v1786_v61 }
 0xb8c   : > { %v1788_v12 = vsel %vm1115_vm1, %v1787_v16, -inf }
 0xbdc   : > { %v1886_v37 = vpop.f32.mrf.mxu1 }
 0xbdd   : > { %v1889_v29 = vsel %vm1785_vm8, -1e+28, %v1886_v37 }
 0xbde   : > { %v1890_v38 = vmul.f32 0.17677669, %v1889_v29 }
 0xbe0   : > { %v1891_v39 = vsel %vm1115_vm1, %v1890_v38, -inf }
 0xbe1   : > { %1892 = vmax.xlane.f32.xlu2 %v1891_v39 }
 0xbf4   : > { %v2030_v40 = vpop.f32.mrf.mxu1 }
 0xbf5   : > { %v2033_v41 = vsel %vm1785_vm8, -1e+28, %v2030_v40 }
 0xbf6   : > { %v2034_v42 = vmul.f32 0.17677669, %v2033_v41 }
 0xbf8   : > { %v2035_v43 = vsel %vm1115_vm1, %v2034_v42, -inf }
 0xbf9   : > { %2036 = vmax.xlane.f32.xlu1 %v2035_v43 }
 0xc12   : > { %2133 = vrot.lane.b32.xlu1 %v1730_v11, %s3610_s14 }
 0xc54   : > { %v1893_v44 = vpop.xlane.xlu2 %1892 }
 0xc55   : > { %v1894_v45 = vsub.f32 %v1890_v38, %v1893_v44 }
 0xc57   : > { %v1895_v46 = vmul.f32 1.442695, %v1894_v45 }
 0xc59   : > { %3056 = vpow2.f32 %v1895_v46  ;;  %v1673_v46 = vld [vmem:[#allocation16 + $0x8] sm:$0xf] }
 0xc5f   : > { %v3057_v47 = vpop.eup %3056 }
 0xc60   : > { %v1897_v48 = vsel %vm1115_vm1, %v3057_v47, 0.0 }
 0xc61   : > { %1898 = vadd.xlane.f32.xlu0 %v1897_v48 }
 0xc6c   : > { %v2037_v49 = vpop.xlane.xlu1 %2036 }
 0xc6d   : > { %v2038_v50 = vsub.f32 %v2034_v42, %v2037_v49 }
 0xc6f   : > { %v2039_v51 = vmul.f32 1.442695, %v2038_v50  ;;  %v1671_v50 = vld [vmem:[#allocation16] sm:$0xf] }
 0xc71   : > { %3058 = vpow2.f32 %v2039_v51  ;;  %v1990_v51 = vsel %vm1327_vm3, %v1671_v50, 0 }
 0xc72   : > { %1999 = vmatpush.bf16.msra.mxu0 %v1990_v51 }
 0xc77   : > { %v3059_v52 = vpop.eup %3058 }
 0xc78   : > { %v2041_v53 = vsel %vm1115_vm1, %v3059_v52, 0.0 }
 0xc79   : > { %2042 = vadd.xlane.f32.xlu2 %v2041_v53 }
 0xc84   : > { %v2134_v4 = vpop.permute.xlu1 %2133 }
 0xc91   : > { %2131 = vrot.lane.b32.xlu2 %v1701_v31, %s3610_s14 }
 0xcd4   : > { %v1899_v54 = vpop.xlane.xlu0 %1898 }
 0xcd5   : > { %3060 = vrcp.f32 %v1899_v54 }
 0xcdb   : > { %v3061_v55 = vpop.eup %3060 }
 0xcdc   : > { %v1901_v56 = vmul.f32 %v3061_v55, %v3057_v47  ;;  %v2115_v47 = vsel %vm1327_vm3, %v1673_v46, 0 }
 0xcdd   : > { %2124 = vmatpush.bf16.msrb.mxu1 %v2115_v47 }
 0xcde   : > { %1902 = vxpose.xlu0.b32.start.end [1/1] (short) (narrow) %v1901_v56, 8 }
 0xcec   : > { %v2043_v57 = vpop.xlane.xlu2 %2042 }
 0xced   : > { %3062 = vrcp.f32 %v2043_v57 }
 0xcf3   : > { %v3063_v58 = vpop.eup %3062 }
 0xcf4   : > { %v2045_v59 = vmul.f32 %v3063_v58, %v3059_v52  ;;  %v2132_v3 = vpop.permute.xlu2 %2131  ;;  %v1674_v58 = vld [vmem:[#allocation16 + $0xc] sm:$0xf] }
 0xcf6   : > { %2046 = vxpose.xlu1.b32.start.end [1/1] (short) (narrow) %v2045_v59, 8  ;;  %v2241_v59 = vsel %vm1327_vm3, %v1674_v58, 0 }
 0xd82   : > { %v1918_v62 = vpop.trf.xlu0 }
 0xd83   : > { %2778 = vmatmul.msk.f32.vlgmr.msra.gmra.mxu2 %vm1115_vm1, %v1918_v62 }
 0xd84   : > { %2785 = vmatpush.xpose.msk.msra.mxu2 %vm1115_vm1, %v2134_v4 }
 0xd9a   : > { %v2062_v2 = vpop.trf.xlu1 }
 0xd9b   : > { %2783 = vmatmul.msk.f32.vlgmr.msrb.gmra.mxu2 %vm1115_vm1, %v2062_v2 }
 0xda3   : > { %2786 = vmatmul.msk.f32.vlgmr.msra.gmra.mxu2 %vm1115_vm1, %v2132_v3 }
 0xe06   : > { %v1954_v6 = vpop.f32.mrf.mxu2 }
 0xe07   : > { %1959 = vperm.xlu0 %3024, %v1954_v6   ;;  %v3029_v6 = vld [vmem:[#allocation17] ss:$0 sm:$0xff] }
 0xe1e   : > { %v2098_v9 = vpop.f32.mrf.mxu2 }
 0xe26   : > { %v2156_v11 = vpop.f32.mrf.mxu2 }
 0xe27   : > { %v2159_v13 = vsel %vm1785_vm8, -1e+28, %v2156_v11 }
 0xe28   : > { %v2160_v14 = vmul.f32 0.17677669, %v2159_v13 }
 0xe2a   : > { %v2161_v15 = vsel %vm1115_vm1, %v2160_v14, -inf }
 0xe2b   : > { %2162 = vmax.xlane.f32.xlu2 %v2161_v15 }
 0xe33   : > { %1789 = vmax.xlane.f32.xlu2 %v1788_v12 }
 0xe79   : > { %v1960_v17 = vpop.permute.xlu0 %1959 }
 0xe7a   : > { %v1962_v18 = vmul.f32 %v1960_v17, %v4106_v7 }
 0xe7c   : > { %v1963_v19 = vpack.c.bf16 %v1962_v18, %v1962_v18  ;;  %v2832_v18 = vld [vmem:[#allocation22 + $0x8] sm:$0xff] }
 0xe7d   : > { %2324 = vmatpush.bf16.msrb.mxu2 %v2832_v18 }
 0xe7e   : > { %1965 = vrot.lane.b32.xlu1 %v1963_v19, %s3608_s4  ;;  %v2831_v19 = vld [vmem:[#allocation22] sm:$0xff]  ;;  %s4271_s4 = sld [smem:[#allocation49_spill]] }
 0xe81   : > { %2325 = vmatpush.bf16.msrb.mxu2 %v2831_v19 }
 0xe9e   : > { %v2163_v22 = vpop.xlane.xlu2 %2162 }
 0xe9f   : > { %v2164_v23 = vsub.f32 %v2160_v14, %v2163_v22  ;;  %v2835_v22 = vld [vmem:[%s4271_s4 + $0x10] sm:$0xff] }
 0xea1   : > { %v2165_v24 = vmul.f32 1.442695, %v2164_v23 }
 0xea3   : > { %3064 = vpow2.f32 %v2165_v24  ;;  %v2834_v24 = vld [vmem:[%s4271_s4 + $0x8] sm:$0xff] }
 0xea6   : > { %v1790_v25 = vpop.xlane.xlu2 %1789 }
 0xea7   : > { %v1791_v26 = vsub.f32 %v1787_v16, %v1790_v25 }
 0xea9   : > { %v3065_v28 = vpop.eup %3064  ;;  %v1792_v30 = vmul.f32 1.442695, %v1791_v26 }
 0xeaa   : > { %v2167_v31 = vsel %vm1115_vm1, %v3065_v28, 0.0 }
 0xeab   : > { %3066 = vpow2.f32 %v1792_v30  ;;  %2168 = vadd.xlane.f32.xlu2 %v2167_v31 }
 0xeb1   : > { %v3067_v32 = vpop.eup %3066 }
 0xeb2   : > { %v1794_v33 = vsel %vm1115_vm1, %v3067_v32, 0.0 }
 0xeb3   : > { %1795 = vadd.xlane.f32.xlu2 %v1794_v33  ;;  %v3030_v33 = vld [vmem:[#allocation19] ss:$0 sm:$0xff] }
 0xef0   : > { %v1966_v34 = vpop.permute.xlu1 %1965 }
 0xef1   : > { %2779 = vmatmul.msk.bf16.vlgmr.msrb.gmra.mxu3 %vm1115_vm1, %v1966_v34 }
 0xf1e   : > { %v2169_v10 = vpop.xlane.xlu2 %2168 }
 0xf1f   : > { %3068 = vrcp.f32 %v2169_v10  ;;  %v3031_v10 = vld [vmem:[#allocation20] ss:$0 sm:$0xff] }
 0xf25   : > { %v3069_v35 = vpop.eup %3068 }
 0xf26   : > { %v1796_v36 = vpop.xlane.xlu2 %1795  ;;  %v2171_v37 = vmul.f32 %v3069_v35, %v3065_v28 }
 0xf27   : > { %3070 = vrcp.f32 %v1796_v36 }
 0xf28   : > { %2172 = vxpose.xlu2.b32.start.end [1/1] (short) (narrow) %v2171_v37, 8 }
 0xf2d   : > { %v3071_v29 = vpop.eup %3070 }
 0xf2e   : > { %v1798_v38 = vmul.f32 %v3071_v29, %v3067_v32 }
 0xf30   : > { %1799 = vxpose.xlu2.b32.start.end [1/1] (short) (narrow) %v1798_v38, 8  ;;  %v2833_v38 = vld [vmem:[%s4271_s4] sm:$0xff] }
 0xf74   : > { %v1982_v39 = vpop.f32.mrf.mxu3 }
 0xf7c   : > { %v1984_v40 = vpop.f32.mrf.mxu3 }
 0xf92   : > { %3025 = vset.pattern.permute.xlu2 %v3611_v60 }
 0xf99   : > { %2103 = vperm.xlu2 %3025, %v2098_v9  }
 0xfc1   : > { %v2188_v41 = vpop.trf.xlu2 }
 0xfc2   : > { %2787 = vmatmul.msk.f32.vlgmr.msra.gmra.mxu3 %vm1115_vm1, %v2188_v41 }
 0xfc9   : > { %v1815_v42 = vpop.trf.xlu2 }
 0xfca   : > { %2775 = vmatmul.msk.f32.vlgmr.msrb.gmra.mxu0 %vm1115_vm1, %v1815_v42 }
 0xfcb   : > { %2250 = vmatpush.bf16.msrb.mxu0 %v2241_v59 }
 0xff3   : > { %v2104_v43 = vpop.permute.xlu2 %2103 }
 0xff4   : > { %v2106_v44 = vmul.f32 %v2104_v43, %v4106_v7 }
 0xff6   : > { %v2107_v45 = vpack.c.bf16 %v2106_v44, %v2106_v44 }
 0xff8   : > { %2109 = vrot.lane.b32.xlu1 %v2107_v45, %s3607_s11  ;;  %v3033_v45 = vld [vmem:[%s4272_s2] ss:$0 sm:$0xff]  ;;  %s2433_s2 = sshll.u32 %s1000_s7, 4  ;;  %s2434_s2 = int_to_ptr.vmem [resolvable:$true] %s2433_s2 }
0x1045   : > { %v2224_v48 = vpop.f32.mrf.mxu3 }
0x1046   : > { %2229 = vperm.xlu0 %3024, %v2224_v48  }
0x1047   : > { %v1851_v60 = vpop.f32.mrf.mxu0 }
0x104e   : > { %1856 = vperm.xlu0 %3024, %v1851_v60  }
0x106a   : > { %v2110_v49 = vpop.permute.xlu1 %2109 }
0x106b   : > { %2784 = vmatmul.msk.bf16.vlgmr.msrb.gmra.mxu1 %vm1115_vm1, %v2110_v49 }
0x10b8   : > { %v2230_v52 = vpop.permute.xlu0 %2229 }
0x10b9   : > { %v2232_v53 = vmul.f32 %v2230_v52, %v4106_v7 }
0x10bb   : > { %v2233_v54 = vpack.c.bf16 %v2232_v53, %v2232_v53 }
0x10bd   : > { %2235 = vrot.lane.b32.xlu0 %v2233_v54, %s3610_s14  ;;  %s4273_s14 = sld [smem:[#allocation51_spill]] }
0x10c0   : > { %v1857_v55 = vpop.permute.xlu0 %1856 }
0x10c1   : > { %v1859_v56 = vmul.f32 %v1857_v55, %v4106_v7 }
0x10c3   : > { %v1860_v57 = vpack.c.bf16 %v1859_v56, %v1859_v56 }
0x10c5   : > { %2780 = vmatmul.msk.bf16.vlgmr.msra.gmra.mxu0 %vm1115_vm1, %v1860_v57 }
0x10e8   : > { %v2126_v62 = vpop.f32.mrf.mxu1 }
0x10f0   : > { %v2128_v4 = vpop.f32.mrf.mxu1 }
0x112f   : > { %v2236_v63 = vpop.permute.xlu0 %2235 }
0x1130   : > { %2788 = vmatmul.msk.bf16.vlgmr.msrb.gmra.mxu0 %vm1115_vm1, %v2236_v63 }
0x1142   : > { %v2001_v0 = vpop.f32.mrf.mxu0 }
0x1143   : > { %v2002_v3 = vadd.f32 %v2001_v0, %v1982_v39  ;;  %v3032_v39 = vld [vmem:[#allocation23] ss:$0 sm:$0xff] }
0x1145   : > { %v2130_v5 = vadd.f32 %v2126_v62, %v2002_v3 }
0x114a   : > { %v2003_v2 = vpop.f32.mrf.mxu0 }
0x114b   : > { %v3034_v2 = vld [vmem:[%s4273_s14] ss:$0 sm:$0xff] }
0x11ad   : > { %v2252_v8 = vpop.f32.mrf.mxu0 }
0x11ae   : > { %v2256_v9 = vadd.f32 %v2252_v8, %v2130_v5  ;;  %v3035_v5 = vld [vmem:[%s4275_s29] ss:$0 sm:$0xff] }
0x11b0   : > { %v2260_v7 = vadd.f32 %v3029_v6, %v2256_v9 }
0x11b2   : > { %v2263_v11 = vadd.f32 %v2260_v7, %v4078_v27  ;;  %v2836_v27 = vld [vmem:[%s4271_s4 + $0x18] sm:$0xff]  ;;  %s2435_s4 = sshll.u32 %s2431_s25, 4  ;;  %s2436_s4 = int_to_ptr.hbm [resolvable:$true] %s2435_s4 }
0x11b3   : > { %2377 = vmatpush.bf16.msra.mxu1 %v2836_v27  ;;  %s3510_s11 = sshra.s32 %s2436_s4, 4  ;;  %s3511_s11 = int_to_ptr.hbm [resolvable:$true] %s3510_s11 }
0x11b4   : > { %v2264_v13 = vsel %vm1048_vm0, %v2263_v11, 0.0  ;;  %s3512_s6 = scalar_lea.hbm %s3511_s11, 8  ;;  %p3517_p8 = scmp.lt.s32.totalorder %s3511_s11, %s4274_s1 }
0x11b5   : > { %v2254_v14 = vpop.f32.mrf.mxu0  ;;  %2265 = vadd.xlane.f32.xlu1 %v2264_v13  ;;  %p3513_p1 = scmp.ne.s32.totalorder %s3511_s11, %s3512_s6  ;;  %p3518_p7 = scmp.lt.s32.totalorder %s3516_s24, %s3512_s6 }
0x11b7   : > { %2378 = vmatpush.bf16.msra.mxu1 %v2835_v22  ;;  %p3514_p5 = pnand %p3513_p1, %p3891_p13  ;;  %p3519_p9 = por %p3518_p7, %p3517_p8 }
0x11b9   : > { %p3515_p12 = pneg %p3514_p5 }
0x11bb   : > { %2379 = vmatpush.bf16.msra.mxu1 %v2834_v24  ;;  %p3520_p10 = pnand %p3519_p9, %p3515_p12 }
0x11bf   : > { %2380 = vmatpush.bf16.msra.mxu1 %v2833_v38 }
0x1228   : > { %v2266_v15 = vpop.xlane.xlu1 %2265 }
0x1229   : > { %v2267_v61 = vmul.f32 %v2266_v15, %v4062_v1 }
0x122b   : > { %v2268_v16 = vsub.f32 %v2263_v11, %v2267_v61 }
0x122d   : > { %v2269_v12 = vmul.f32 %v2268_v16, %v2268_v16 }
0x122f   : > { %v2270_v17 = vsel %vm1048_vm0, %v2269_v12, 0.0 }
0x1230   : > { %2271 = vadd.xlane.f32.xlu0 %v2270_v17 }
0x12a3   : > { %v2272_v20 = vpop.xlane.xlu0 %2271 }
0x12a4   : > { %v2273_v21 = vmul.f32 %v2272_v20, %v4062_v1 }
0x12a6   : > { %v2274_v23 = vadd.f32 1e-05, %v2273_v21 }
0x12a8   : > { %3072 = vrsqrt.f32 %v2274_v23  ;;  %vm2281_vm10 = vweird.f32 %v2274_v23 }
0x12ae   : > { %v3073_v25 = vpop.eup %3072 }
0x12af   : > { %v2276_v26 = vmul.f32 %v3073_v25, %v2274_v23  ;;  %vm2282_vm9 = vweird.f32 %v3073_v25 }
0x12b0   : > { %vm2283_vm11 = vmor %vm2281_vm10, %vm2282_vm9 }
0x12b1   : > { %v2277_v28 = vmul.f32 %v3073_v25, %v2276_v26 }
0x12b3   : > { %v2278_v30 = vmul.f32 0.5, %v2277_v28 }
0x12b5   : > { %v2279_v31 = vsub.f32 1.5, %v2278_v30 }
0x12b7   : > { %v2280_v32 = vmul.f32 %v3073_v25, %v2279_v31 }
0x12b9   : > { %v2284_v34 = vsel %vm2283_vm11, %v3073_v25, %v2280_v32 }
0x12ba   : > { %v2285_v35 = vmul.f32 %v2284_v34, %v2268_v16 }
0x12bc   : > { %v2289_v36 = vmul.f32 %v3030_v33, %v2285_v35 }
0x12be   : > { %v2293_v37 = vadd.f32 %v3031_v10, %v2289_v36 }
0x12c0   : > { %v2294_v29 = vpack.c.bf16 %v2293_v37, %v2293_v37 }
0x12c2   : > { %2797 = vmatmul.msk.bf16.vlgmr.msrb.gmra.mxu2 %vm1048_vm0, %v2294_v29 }
0x1345   : > { %v2327_v40 = vpop.f32.mrf.mxu2 }
0x1346   : > { %v2328_v41 = vadd.f32 %v3032_v39, %v2327_v40 }
0x1348   : > { %v2331_v42 = vmax.f32 %v2328_v41, 0.0 }
0x134a   : > { %v2332_v43 = vpack.c.bf16 %v2331_v42, %v2331_v42 }
0x134c   : > { %2814 = vmatmul.msk.bf16.vlgmr.msra.gmra.mxu1 %vm2369_vm12, %v2332_v43 }
0x134d   : > { %v2329_v44 = vpop.f32.mrf.mxu2 }
0x13c9   : > { %v2382_v46 = vpop.f32.mrf.mxu1 }
0x13ca   : > { %v2383_v47 = vadd.f32 %v3033_v45, %v2382_v46 }
0x13cc   : > { %v2388_v48 = vadd.f32 %v2383_v47, %v2293_v37 }
0x13ce   : > { %v2389_v60 = vsel %vm1048_vm0, %v2388_v48, 0.0 }
0x13cf   : > { %2390 = vadd.xlane.f32.xlu1 %v2389_v60 }
0x13d1   : > { %v2384_v49 = vpop.f32.mrf.mxu1 }
0x1442   : > { %v2391_v50 = vpop.xlane.xlu1 %2390 }
0x1443   : > { %v2392_v51 = vmul.f32 %v2391_v50, %v4062_v1 }
0x1445   : > { %v2393_v52 = vsub.f32 %v2388_v48, %v2392_v51 }
0x1447   : > { %v2394_v53 = vmul.f32 %v2393_v52, %v2393_v52 }
0x1449   : > { %v2395_v54 = vsel %vm1048_vm0, %v2394_v53, 0.0 }
0x144a   : > { %2396 = vadd.xlane.f32.xlu0 %v2395_v54 }
0x14bd   : > { %v2397_v55 = vpop.xlane.xlu0 %2396 }
0x14be   : > { %v2398_v56 = vmul.f32 %v2397_v55, %v4062_v1 }
0x14c0   : > { %v2399_v57 = vadd.f32 1e-05, %v2398_v56 }
0x14c2   : > { %3074 = vrsqrt.f32 %v2399_v57  ;;  %vm2406_vm14 = vweird.f32 %v2399_v57 }
0x14c8   : > { %v3075_v58 = vpop.eup %3074 }
0x14c9   : > { %v2401_v59 = vmul.f32 %v3075_v58, %v2399_v57  ;;  %vm2407_vm13 = vweird.f32 %v3075_v58 }
0x14ca   : > { %vm2408_vm15 = vmor %vm2406_vm14, %vm2407_vm13 }
0x14cb   : > { %v2402_v62 = vmul.f32 %v3075_v58, %v2401_v59 }
0x14cd   : > { %v2403_v4 = vmul.f32 0.5, %v2402_v62 }
0x14cf   : > { %v2404_v63 = vsub.f32 1.5, %v2403_v4 }
0x14d1   : > { %v2405_v0 = vmul.f32 %v3075_v58, %v2404_v63 }
0x14d3   : > { %v2409_v1 = vsel %vm2408_vm15, %v3075_v58, %v2405_v0 }
0x14d4   : > { %v2410_v3 = vmul.f32 %v2409_v1, %v2393_v52 }
0x14d6   : > { %v2414_v6 = vmul.f32 %v3034_v2, %v2410_v3 }
0x14d8   : > { %v2418_v8 = vadd.f32 %v3035_v5, %v2414_v6 }
0x14da   : > { %2419 = vst.msk [vmem:[%s1000_s7] sm:$0xff] %vm1048_vm0, %v2418_v8 }
0x14db   : > { %3523 = shalt.err (!%p3520_p10)
}
0x14dc   : > { %2891 = dma.vmem_to_hbm [thread:$0]  (%p3891_p13), %s2434_s2, 128, %s2436_s4, %s2421_s12  }
0x14dd PF: > { %s2447_s0 = sand.u32 1, %s3578_s5   ;;  %p4276_p11 = scmp.ge.s32.totalorder %s3590_s28, 2 }
0x14de   : > { %s2448_s21 = scalar_lea.sflag [#allocation4], %s2447_s0 }
0x14df   : > { %p2938_p0 = pnand %p4276_p11, %p3896_p4 }
0x14e1   : > { %p2939_p2 = pneg %p2938_p0 }
0x14e3   : > { %3573 = dma.done.wait (%p2939_p2), %s2448_s21, 128  }
0x14e4   : > { %3575 = vsyncadd (%p2939_p2), %s2448_s21, 4294967168  ;;  %p44_p6 = scmp.ge.s32.totalorder %s3871_s8, 4   ;;  %s4277_s5 = smov %s3582_s26 }
0x14e5   : > { %s4278_s26 = smov %s3586_s27  ;;  %s4279_s27 = smov %s3883_s20 }
0x14e6   : > { %s4280_s28 = smov %s3871_s8  ;;  %46 = sbr.rel (!%p44_p6) target bundleno = 32 (0x20), region = 222 }
0x14eb   :  { %2454 = vsyncpa [#allocation3], 1 }
0x14ec   :  { %2456 = vsyncpa [#allocation3 + $0x1], 1 }
0x14ed   :  { %2457 = vsyncpa [#allocation6], 1 }
0x14ee   :  { %2458 = vsyncpa [#allocation9], 1 }
0x14ef   :  { %2459 = vsyncpa [#allocation12], 1 }
0x14f0   :  { %2460 = vsyncpa [#allocation15], 1 }
0x14f1   :  { %2461 = vsyncpa [#allocation18], 1 }
0x14f2   :  { %2462 = vsyncpa [#allocation21], 1 }
0x14f3   :  { %2463 = vsyncpa [#allocation24], 1 }
0x14f4   :  { %2464 = vsyncpa [#allocation4], 1 }
0x14f5   :  { %2466 = vsyncpa [#allocation4 + $0x1], 1 }

</bundles_post_ra>
